<compile_context>
chip_gen: v7x
topology: tpu7x:2x2x1
jax: 0.10.0
libtpu: 0.0.40
codegen_flags: <defaults>
</compile_context>

<pallas_src>
import math
from functools import partial

import jax
import jax.numpy as jnp
from jax import lax
from jax.experimental import pallas as pl
from jax.experimental.pallas import tpu as pltpu

# ----------------------------- model hyper-params (small instance) -----------------------
CROSS_DIM = 128          # cross_attention_dim
ID_DIM = 64              # id_embeddings_dim   (NB: 2*ID_DIM == CROSS_DIM in this instance)
CLIP_DIM = 256           # clip_embeddings_dim
NUM_TOKENS = 4           # num_tokens
DEPTH = 4                # resampler depth (fixed in the module)
DIM_HEAD = 64            # fixed in the module
HEADS = CROSS_DIM // DIM_HEAD
FF_MULT = 4
EPS = 1e-5               # nn.LayerNorm default eps

B = 2                    # batch
N_CLIP = 8               # clip-embedding sequence length

_INV_SQRT2 = 1.0 / math.sqrt(2.0)
_ATTN_SCALE = 1.0 / math.sqrt(math.sqrt(DIM_HEAD))   # used by the reference only
_NEG_INF = -1e30

# global f32 slab (width CROSS_DIM) row layout
_GF_B1 = 0                        # proj bias 1                       (1 row)
_GF_B2 = 1                        # proj bias 2, token-major          (NUM_TOKENS rows)
_GF_NORM_W = 1 + NUM_TOKENS       # self.norm weight
_GF_NORM_B = 2 + NUM_TOKENS       # self.norm bias
_GF_PIN_B = 3 + NUM_TOKENS        # resampler proj_in bias
_GF_POUT_B = 4 + NUM_TOKENS       # resampler proj_out bias
_GF_NOUT_W = 5 + NUM_TOKENS       # resampler norm_out weight
_GF_NOUT_B = 6 + NUM_TOKENS       # resampler norm_out bias
_GF_ROWS = 7 + NUM_TOKENS

# global bf16 slab (width CROSS_DIM) row layout
_GA_W1 = 0                                 # proj weight 1   (ID_DIM rows)
_GA_PIN = ID_DIM                           # proj_in weight  (CLIP_DIM rows)
_GA_POUT = ID_DIM + CLIP_DIM               # proj_out weight (CROSS_DIM rows)
_GA_ROWS = ID_DIM + CLIP_DIM + CROSS_DIM


# ----------------------------- shared math helpers (usable in-kernel) --------------------
def _gelu(x):
    # exact (erf based) GELU, matching torch.nn.GELU() default
    return 0.5 * x * (1.0 + lax.erf(x * _INV_SQRT2))


def _ln(x, w, b):
    # LayerNorm over the last axis, biased variance, matching nn.LayerNorm
    mu = jnp.mean(x, axis=-1, keepdims=True)
    var = jnp.mean(jnp.square(x - mu), axis=-1, keepdims=True)
    return (x - mu) * lax.rsqrt(var + EPS) * w + b


# ----------------------------- fused, depth-pipelined Pallas kernel ----------------------
def _fused_kernel(bias_ref, idx_ref, clip_ref, ga_ref, gw2_ref, gf_ref,
                  la_ref, lb_ref, lf_ref,
                  out_ref, xtok_ref,
                  lat_ref, feats_ref, *, batch, n_clip):
    f32 = jnp.float32
    bf16 = jnp.bfloat16
    d = pl.program_id(0)
    rows = batch * NUM_TOKENS

    # ---------------- stage 0 (first grid step only): proj MLP -> LN, proj_in -------------
    @pl.when(d == 0)
    def _prologue():
        # id rows are pre-replicated to (B*T, ID_DIM) in the wrapper; M<=8 rows are one MXU
        # pass either way, and this avoids any (B, T*D) -> (B*T, D) retile inside the kernel.
        h = jnp.dot(idx_ref[...].astype(bf16),
                    ga_ref[_GA_W1:_GA_W1 + ID_DIM, :],
                    preferred_element_type=f32) + gf_ref[_GF_B1:_GF_B1 + 1, :]
        h = _gelu(h)
        full = jnp.dot(h.astype(bf16), gw2_ref[...],
                       preferred_element_type=f32)                      # (B*T, T*D)
        # row r (= b*T + t) keeps only its own 128-lane token chunk t = r % T
        tok = lax.broadcasted_iota(jnp.int32, (rows, 1), 0) % NUM_TOKENS
        x8 = None
        for t in range(NUM_TOKENS):
            chunk = (full[:, t * CROSS_DIM:(t + 1) * CROSS_DIM]
                     + gf_ref[_GF_B2 + t:_GF_B2 + t + 1, :])
            sel = jnp.where(tok == t, chunk, 0.0)
            x8 = sel if x8 is None else x8 + sel
        x_tok = _ln(x8, gf_ref[_GF_NORM_W:_GF_NORM_W + 1, :],
                    gf_ref[_GF_NORM_B:_GF_NORM_B + 1, :])
        xtok_ref[...] = x_tok
        lat_ref[...] = x_tok
        # resampler proj_in on batch-folded clip features
        feats_ref[...] = (jnp.dot(clip_ref[...].astype(bf16),
                                  ga_ref[_GA_PIN:_GA_PIN + CLIP_DIM, :],
                                  preferred_element_type=f32)
                          + gf_ref[_GF_PIN_B:_GF_PIN_B + 1, :])

    # ---------------- one resampler layer per grid step -----------------------------------
    latents = lat_ref[...]                                              # (B*T, D) f32
    feats = feats_ref[...]                                              # (B*n1, D) f32

    # PerceiverAttention
    xn = _ln(feats, lf_ref[0:1, :], lf_ref[1:2, :])
    latn = _ln(latents, lf_ref[2:3, :], lf_ref[3:4, :])
    kvin = jnp.concatenate([xn, latn], axis=0).astype(bf16)             # (B*(n1+T), D)
    qkv = jnp.dot(kvin, la_ref[0:CROSS_DIM, 0:3 * CROSS_DIM],           # merged [wq|wk|wv]
                  preferred_element_type=f32)                           # (B*(n1+T), 3D)
    nq0 = batch * n_clip
    q = qkv[nq0:, 0:CROSS_DIM]                                          # latent rows only
    k = qkv[:, CROSS_DIM:2 * CROSS_DIM]
    v = qkv[:, 2 * CROSS_DIM:3 * CROSS_DIM]
    bias = bias_ref[...]                                                # block-diagonal mask

    o_parts = []
    for hh in range(HEADS):
        lo, hi = hh * DIM_HEAD, (hh + 1) * DIM_HEAD
        # q already carries the full 1/sqrt(dim_head) scale (folded into wq at pack time)
        s = lax.dot_general(q[:, lo:hi], k[:, lo:hi],
                            dimension_numbers=(((1,), (1,)), ((), ())),
                            preferred_element_type=f32) + bias          # (B*T, B*(n1+T))
        m = jnp.max(s, axis=-1, keepdims=True)
        e = jnp.exp(s - m)
        p = e * pl.reciprocal(jnp.sum(e, axis=-1, keepdims=True), approx=True)
        o_parts.append(jnp.dot(p, v[:, lo:hi], preferred_element_type=f32))   # (B*T, 64)
    o = jnp.concatenate(o_parts, axis=-1).astype(bf16)                  # (B*T, D)
    latents = latents + jnp.dot(o, la_ref[0:CROSS_DIM, 3 * CROSS_DIM:4 * CROSS_DIM],
                                preferred_element_type=f32)             # to_out + residual

    # FeedForward: LN -> Linear(no bias) -> GELU -> Linear(no bias), + residual
    fx = _ln(latents, lf_ref[4:5, :], lf_ref[5:6, :]).astype(bf16)
    fh = _gelu(jnp.dot(fx, la_ref[CROSS_DIM:2 * CROSS_DIM, :],
                       preferred_element_type=f32))                     # (B*T, 4D)
    latents = latents + jnp.dot(fh.astype(bf16), lb_ref[...],
                                preferred_element_type=f32)
    lat_ref[...] = latents

    # ---------------- final projection (last grid step only) ------------------------------
    @pl.when(d == pl.num_programs(0) - 1)
    def _epilogue():
        out = jnp.dot(latents.astype(bf16),
                      ga_ref[_GA_POUT:_GA_POUT + CROSS_DIM, :],
                      preferred_element_type=f32) + gf_ref[_GF_POUT_B:_GF_POUT_B + 1, :]
        out_ref[...] = _ln(out, gf_ref[_GF_NOUT_W:_GF_NOUT_W + 1, :],
                           gf_ref[_GF_NOUT_B:_GF_NOUT_B + 1, :])


# ----------------------------- pallas_call wrapper ---------------------------------------
def _const2(shape):
    # full-array block, resident across the depth grid (no re-DMA: block index never changes)
    return pl.BlockSpec(shape, lambda d: (0, 0))


def forward(packed, id_embeds, clip_embeds, scale=1.0, shortcut=False):
    ga, gw2, gf, la, lb, lf = packed
    bq = id_embeds.shape[0]
    n1 = clip_embeds.shape[1]
    rows = bq * NUM_TOKENS
    clip_flat = clip_embeds.reshape(bq * n1, CLIP_DIM)
    id_exp = jnp.repeat(id_embeds, NUM_TOKENS, axis=0)                  # (B*T, ID_DIM)

    # block-diagonal (per-batch) additive attention mask over folded kv rows [x ; latents]
    qb_ = jnp.repeat(jnp.arange(bq), NUM_TOKENS)
    kb_ = jnp.concatenate([jnp.repeat(jnp.arange(bq), n1),
                           jnp.repeat(jnp.arange(bq), NUM_TOKENS)])
    attn_bias = jnp.where(qb_[:, None] == kb_[None, :], 0.0, _NEG_INF).astype(jnp.float32)

    kernel = partial(_fused_kernel, batch=bq, n_clip=n1)
    out_flat, x_tok = pl.pallas_call(
        kernel,
        out_shape=(jax.ShapeDtypeStruct((rows, CROSS_DIM), jnp.float32),
                   jax.ShapeDtypeStruct((rows, CROSS_DIM), jnp.float32)),
        grid=(DEPTH,),
        in_specs=[
            _const2(attn_bias.shape),
            _const2(id_exp.shape),
            _const2(clip_flat.shape),
            _const2(ga.shape),
            _const2(gw2.shape),
            _const2(gf.shape),
            # per-layer weight slabs, streamed / double-buffered by depth
            pl.BlockSpec((None, 2 * CROSS_DIM, 4 * CROSS_DIM), lambda d: (d, 0, 0)),
            pl.BlockSpec((None, FF_MULT * CROSS_DIM, CROSS_DIM), lambda d: (d, 0, 0)),
            pl.BlockSpec((None, 6, CROSS_DIM), lambda d: (d, 0, 0)),
        ],
        out_specs=[
            pl.BlockSpec((rows, CROSS_DIM), lambda d: (0, 0)),
            pl.BlockSpec((rows, CROSS_DIM), lambda d: (0, 0)),
        ],
        scratch_shapes=[
            pltpu.VMEM((rows, CROSS_DIM), jnp.float32),      # latents (persists across depth)
            pltpu.VMEM((bq * n1, CROSS_DIM), jnp.float32),   # projected clip features
        ],
        compiler_params=pltpu.CompilerParams(dimension_semantics=("arbitrary",)),
    )(attn_bias, id_exp, clip_flat, ga, gw2, gf, la, lb, lf)

    out = out_flat.reshape(bq, NUM_TOKENS, CROSS_DIM)
    if shortcut:
        out = x_tok.reshape(bq, NUM_TOKENS, CROSS_DIM) + scale * out
    return out


# ----------------------------- parameters -------------------------------------------------
def init_params(key):
    keys = iter(jax.random.split(key, 64))

    def w(shape, s=0.02):
        return jax.random.normal(next(keys), shape, jnp.float32) * s

    ones = lambda d_: jnp.ones((1, d_), jnp.float32)
    zeros = lambda d_: jnp.zeros((1, d_), jnp.float32)
    inner = HEADS * DIM_HEAD

    params = dict(
        # self.proj
        proj_w1=w((ID_DIM, 2 * ID_DIM)), proj_b1=w((1, 2 * ID_DIM)),
        proj_w2=w((2 * ID_DIM, CROSS_DIM * NUM_TOKENS)), proj_b2=w((1, CROSS_DIM * NUM_TOKENS)),
        # self.norm
        norm_w=ones(CROSS_DIM), norm_b=zeros(CROSS_DIM),
        # resampler proj_in / proj_out / norm_out
        proj_in_w=w((CLIP_DIM, CROSS_DIM)), proj_in_b=w((1, CROSS_DIM)),
        proj_out_w=w((CROSS_DIM, CROSS_DIM)), proj_out_b=w((1, CROSS_DIM)),
        norm_out_w=ones(CROSS_DIM), norm_out_b=zeros(CROSS_DIM),
    )
    layers = []
    for _ in range(DEPTH):
        layers.append(dict(
            n1w=ones(CROSS_DIM), n1b=zeros(CROSS_DIM),
            n2w=ones(CROSS_DIM), n2b=zeros(CROSS_DIM),
            wq=w((CROSS_DIM, inner)), wkv=w((CROSS_DIM, 2 * inner)), wo=w((inner, CROSS_DIM)),
            ff_nw=ones(CROSS_DIM), ff_nb=zeros(CROSS_DIM),
            ff_w1=w((CROSS_DIM, FF_MULT * CROSS_DIM)), ff_w2=w((FF_MULT * CROSS_DIM, CROSS_DIM)),
        ))
    params['layers'] = layers
    return params


def pack_params(params):
    """One-time host-side prep: pack weights into a few DMA slabs, stack per-layer weights
    over depth, fold the softmax scale into wq, cast matmul weights to bf16 (done once).
    NOTE: this packing assumes 2*ID_DIM == CROSS_DIM (true for this scaled instance)."""
    bf16 = jnp.bfloat16
    inner = HEADS * DIM_HEAD

    ga = jnp.concatenate([params['proj_w1'], params['proj_in_w'],
                          params['proj_out_w']], axis=0).astype(bf16)        # (448, 128)
    gw2 = params['proj_w2'].astype(bf16)                                     # (128, 512)
    gf = jnp.concatenate([
        params['proj_b1'],
        params['proj_b2'].reshape(NUM_TOKENS, CROSS_DIM),
        params['norm_w'], params['norm_b'],
        params['proj_in_b'], params['proj_out_b'],
        params['norm_out_w'], params['norm_out_b'],
    ], axis=0)                                                               # (11, 128) f32

    qk_scale = 1.0 / math.sqrt(DIM_HEAD)   # full softmax scale, exact power of two (2^-3)
    la_l, lb_l, lf_l = [], [], []
    for l in params['layers']:
        wq = l['wq'] * qk_scale
        wk = l['wkv'][:, :inner]
        wv = l['wkv'][:, inner:]
        row0 = jnp.concatenate([wq, wk, wv, l['wo']], axis=1)                # (128, 512)
        la_l.append(jnp.concatenate([row0, l['ff_w1']], axis=0))             # (256, 512)
        lb_l.append(l['ff_w2'])                                              # (512, 128)
        lf_l.append(jnp.concatenate([l['n1w'], l['n1b'], l['n2w'], l['n2b'],
                                     l['ff_nw'], l['ff_nb']], axis=0))       # (6, 128)
    la = jnp.stack(la_l, axis=0).astype(bf16)                                # (DEPTH, 256, 512)
    lb = jnp.stack(lb_l, axis=0).astype(bf16)                                # (DEPTH, 512, 128)
    lf = jnp.stack(lf_l, axis=0)                                             # (DEPTH, 6, 128)
    return (ga, gw2, gf, la, lb, lf)


# ----------------------------- pure-JAX reference (for verification) ---------------------
def ref_forward(params, id_embeds, clip_embeds, scale=1.0, shortcut=False, bf16_matmuls=False):
    P = lax.Precision.HIGHEST
    if bf16_matmuls:
        # Mirror the kernel's precision policy: projection/FFN matmul operands in bf16,
        # f32 accumulation; attention score/PV math stays f32.
        dot = lambda a, b: jnp.matmul(a.astype(jnp.bfloat16), b.astype(jnp.bfloat16),
                                      preferred_element_type=jnp.float32)
    else:
        dot = lambda a, b: jnp.matmul(a, b, precision=P)
    Bq = id_embeds.shape[0]

    h = _gelu(dot(id_embeds, params['proj_w1']) + params['proj_b1'])
    x = dot(h, params['proj_w2']) + params['proj_b2']
    x = x.reshape(Bq, NUM_TOKENS, CROSS_DIM)
    x = _ln(x, params['norm_w'], params['norm_b'])

    feats = dot(clip_embeds, params['proj_in_w']) + params['proj_in_b']
    latents = x
    sc = _ATTN_SCALE
    for layer in params['layers']:
        xn = _ln(feats, layer['n1w'], layer['n1b'])
        latn = _ln(latents, layer['n2w'], layer['n2b'])
        q = dot(latn, layer['wq'])
        kv = dot(jnp.concatenate([xn, latn], axis=1), layer['wkv'])
        k, v = jnp.split(kv, 2, axis=-1)
        L, Lk = q.shape[1], k.shape[1]
        qh = q.reshape(Bq, L, HEADS, DIM_HEAD).transpose(0, 2, 1, 3)
        kh = k.reshape(Bq, Lk, HEADS, DIM_HEAD).transpose(0, 2, 1, 3)
        vh = v.reshape(Bq, Lk, HEADS, DIM_HEAD).transpose(0, 2, 1, 3)
        wgt = jnp.einsum('bhqd,bhkd->bhqk', qh * sc, kh * sc, precision=P)
        wgt = jax.nn.softmax(wgt, axis=-1)
        o = jnp.einsum('bhqk,bhkd->bhqd', wgt, vh, precision=P)
        o = o.transpose(0, 2, 1, 3).reshape(Bq, L, HEADS * DIM_HEAD)
        latents = dot(o, layer['wo']) + latents
        ffh = _gelu(dot(_ln(latents, layer['ff_nw'], layer['ff_nb']), layer['ff_w1']))
        latents = dot(ffh, layer['ff_w2']) + latents

    out = dot(latents, params['proj_out_w']) + params['proj_out_b']
    out = _ln(out, params['norm_out_w'], params['norm_out_b'])
    if shortcut:
        out = x + scale * out
    return out


# ----------------------------- main ------------------------------------------------------
if __name__ == "__main__":
    key = jax.random.PRNGKey(0)
    k_id, k_clip, k_p = jax.random.split(key, 3)

    id_embeds = jax.random.normal(k_id, (B, ID_DIM), jnp.float32)
    clip_embeds = jax.random.normal(k_clip, (B, N_CLIP, CLIP_DIM), jnp.float32)
    params = init_params(k_p)
    packed = pack_params(params)          # slabs: stacked / head-merged / scale-folded / bf16

    fwd = jax.jit(forward, static_argnames=("scale", "shortcut"))

    out = jax.block_until_ready(fwd(packed, id_embeds, clip_embeds))
    assert out.shape == (B, NUM_TOKENS, CROSS_DIM), out.shape
    assert bool(jnp.all(jnp.isfinite(out)))

    # tight check vs a bf16-matched reference (same matmul precision policy as the kernel;
    # tolerance includes headroom for the approx-reciprocal softmax denominator)
    ref_bf16 = ref_forward(params, id_embeds, clip_embeds, bf16_matmuls=True)
    err_bf16 = float(jnp.max(jnp.abs(out - ref_bf16)))
    assert bool(jnp.allclose(out, ref_bf16, atol=5e-3, rtol=5e-3)), f"bf16-matched max_err={err_bf16}"

    # sanity check vs the full-f32 HIGHEST-precision reference (bf16 matmul rounding allowed)
    ref_f32 = ref_forward(params, id_embeds, clip_embeds, bf16_matmuls=False)
    err_f32 = float(jnp.max(jnp.abs(out - ref_f32)))
    assert bool(jnp.allclose(out, ref_f32, atol=5e-2, rtol=5e-2)), f"f32 max_err={err_f32}"

    # exercise the shortcut / scale path as well
    out_sc = jax.block_until_ready(fwd(packed, id_embeds, clip_embeds, scale=0.75, shortcut=True))
    ref_sc = ref_forward(params, id_embeds, clip_embeds, scale=0.75, shortcut=True, bf16_matmuls=True)
    err_sc = float(jnp.max(jnp.abs(out_sc - ref_sc)))
    assert bool(jnp.allclose(out_sc, ref_sc, atol=5e-3, rtol=5e-3)), f"shortcut max_err={err_sc}"

    print("KERNEL_OK")
</pallas_src>

<mosaic_0001>
module attributes {stable_mosaic.version = 11 : i64} {
  func.func @_fused_kernel(%arg0: i32, %arg1: memref<8x24xf32, #tpu.memory_space<vmem>>, %arg2: memref<8x64xf32, #tpu.memory_space<vmem>>, %arg3: memref<16x256xf32, #tpu.memory_space<vmem>>, %arg4: memref<448x128xbf16, #tpu.memory_space<vmem>>, %arg5: memref<128x512xbf16, #tpu.memory_space<vmem>>, %arg6: memref<11x128xf32, #tpu.memory_space<vmem>>, %arg7: memref<1x256x512xbf16, #tpu.memory_space<vmem>>, %arg8: memref<1x512x128xbf16, #tpu.memory_space<vmem>>, %arg9: memref<1x6x128xf32, #tpu.memory_space<vmem>>, %arg10: memref<8x128xf32, #tpu.memory_space<vmem>>, %arg11: memref<8x128xf32, #tpu.memory_space<vmem>>, %arg12: memref<8x128xf32, #tpu.memory_space<vmem>>, %arg13: memref<16x128xf32, #tpu.memory_space<vmem>>) attributes {dimension_semantics = [#tpu.dimension_semantics<arbitrary>], iteration_bounds = array<i64: 4>, scalar_prefetch = 0 : i64, scratch_operands = 2 : i64, tpu.core_type = #tpu.core_type<tc>, window_params = [{pipeline_mode = #tpu.pipeline_mode<synchronous>, transform_indices = @transform_0, window_bounds = array<i64: 8, 24>}, {pipeline_mode = #tpu.pipeline_mode<synchronous>, transform_indices = @transform_1, window_bounds = array<i64: 8, 64>}, {pipeline_mode = #tpu.pipeline_mode<synchronous>, transform_indices = @transform_2, window_bounds = array<i64: 16, 256>}, {pipeline_mode = #tpu.pipeline_mode<synchronous>, transform_indices = @transform_3, window_bounds = array<i64: 448, 128>}, {pipeline_mode = #tpu.pipeline_mode<synchronous>, transform_indices = @transform_4, window_bounds = array<i64: 128, 512>}, {pipeline_mode = #tpu.pipeline_mode<synchronous>, transform_indices = @transform_5, window_bounds = array<i64: 11, 128>}, {transform_indices = @transform_6, window_bounds = array<i64: 1, 256, 512>}, {transform_indices = @transform_7, window_bounds = array<i64: 1, 512, 128>}, {transform_indices = @transform_8, window_bounds = array<i64: 1, 6, 128>}, {pipeline_mode = #tpu.pipeline_mode<synchronous>, transform_indices = @transform_9, window_bounds = array<i64: 8, 128>}, {pipeline_mode = #tpu.pipeline_mode<synchronous>, transform_indices = @transform_10, window_bounds = array<i64: 8, 128>}]} {
    %c0_i32 = arith.constant 0 : i32
    %0 = arith.cmpi eq, %arg0, %c0_i32 : i32
    %1 = arith.extui %0 : i1 to i32
    %c0_i32_0 = arith.constant 0 : i32
    %2 = arith.cmpi ne, %1, %c0_i32_0 : i32
    scf.if %2 {
      %c0_61 = arith.constant 0 : index
      %c0_62 = arith.constant 0 : index
      %151 = vector.load %arg2[%c0_61, %c0_62] : memref<8x64xf32, #tpu.memory_space<vmem>>, vector<8x64xf32>
      %152 = arith.truncf %151 : vector<8x64xf32> to vector<8x64xbf16>
      %c0_63 = arith.constant 0 : index
      %c0_64 = arith.constant 0 : index
      %153 = vector.load %arg4[%c0_63, %c0_64] : memref<448x128xbf16, #tpu.memory_space<vmem>>, vector<64x128xbf16>
      %cst_65 = arith.constant dense<0.000000e+00> : vector<8x128xf32>
      %154 = tpu.matmul %152, %153, %cst_65 {dimension_numbers = #tpu.dot_dimension_numbers<[1], [0], [0], [1], [0, 0, 1, 1], [], []>} : vector<8x64xbf16>, vector<64x128xbf16>, vector<8x128xf32> -> vector<8x128xf32>
      %c0_66 = arith.constant 0 : index
      %c0_67 = arith.constant 0 : index
      %155 = vector.load %arg6[%c0_66, %c0_67] : memref<11x128xf32, #tpu.memory_space<vmem>>, vector<1x128xf32>
      %156 = vector.broadcast %155 : vector<1x128xf32> to vector<8x128xf32>
      %157 = arith.addf %154, %156 : vector<8x128xf32>
      %cst_68 = arith.constant 5.000000e-01 : f32
      %158 = vector.broadcast %cst_68 : f32 to vector<8x128xf32>
      %159 = arith.mulf %158, %157 : vector<8x128xf32>
      %cst_69 = arith.constant 0.707106769 : f32
      %160 = vector.broadcast %cst_69 : f32 to vector<8x128xf32>
      %161 = arith.mulf %157, %160 : vector<8x128xf32>
      %162 = math.erf %161 : vector<8x128xf32>
      %cst_70 = arith.constant 1.000000e+00 : f32
      %163 = vector.broadcast %cst_70 : f32 to vector<8x128xf32>
      %164 = arith.addf %163, %162 : vector<8x128xf32>
      %165 = arith.mulf %159, %164 : vector<8x128xf32>
      %166 = arith.truncf %165 : vector<8x128xf32> to vector<8x128xbf16>
      %c0_71 = arith.constant 0 : index
      %c0_72 = arith.constant 0 : index
      %167 = vector.load %arg5[%c0_71, %c0_72] : memref<128x512xbf16, #tpu.memory_space<vmem>>, vector<128x512xbf16>
      %cst_73 = arith.constant dense<0.000000e+00> : vector<8x512xf32>
      %168 = tpu.matmul %166, %167, %cst_73 {dimension_numbers = #tpu.dot_dimension_numbers<[1], [0], [0], [1], [0, 0, 1, 1], [], []>} : vector<8x128xbf16>, vector<128x512xbf16>, vector<8x512xf32> -> vector<8x512xf32>
      %169 = tpu.iota {dimensions = array<i32: 0>} : vector<8x1xi32>
      %c4_i32 = arith.constant 4 : i32
      %c0_i32_74 = arith.constant 0 : i32
      %170 = arith.cmpi eq, %c4_i32, %c0_i32_74 : i32
      %c1_i32 = arith.constant 1 : i32
      %171 = arith.select %170, %c1_i32, %c4_i32 : i32
      %172 = vector.broadcast %171 : i32 to vector<8x1xi32>
      %173 = arith.remsi %169, %172 : vector<8x1xi32>
      %c0_i32_75 = arith.constant 0 : i32
      %174 = vector.broadcast %c0_i32_75 : i32 to vector<8x1xi32>
      %175 = arith.cmpi ne, %173, %174 : vector<8x1xi32>
      %c0_i32_76 = arith.constant 0 : i32
      %176 = vector.broadcast %c0_i32_76 : i32 to vector<8x1xi32>
      %177 = arith.cmpi slt, %173, %176 : vector<8x1xi32>
      %c0_i32_77 = arith.constant 0 : i32
      %178 = arith.cmpi slt, %171, %c0_i32_77 : i32
      %179 = vector.broadcast %178 : i1 to vector<8x1xi1>
      %180 = vector.broadcast %179 : vector<8x1xi1> to vector<8x1xi1>
      %181 = arith.xori %177, %180 : vector<8x1xi1>
      %182 = arith.andi %181, %175 : vector<8x1xi1>
      %183 = vector.broadcast %171 : i32 to vector<8x1xi32>
      %184 = arith.addi %173, %183 : vector<8x1xi32>
      %185 = arith.select %182, %184, %173 : vector<8x1xi1>, vector<8x1xi32>
      %186 = vector.extract_strided_slice %168 {offsets = [0, 0], sizes = [8, 128], strides = [1, 1]} : vector<8x512xf32> to vector<8x128xf32>
      %c1_78 = arith.constant 1 : index
      %c0_79 = arith.constant 0 : index
      %187 = vector.load %arg6[%c1_78, %c0_79] : memref<11x128xf32, #tpu.memory_space<vmem>>, vector<1x128xf32>
      %188 = vector.broadcast %187 : vector<1x128xf32> to vector<8x128xf32>
      %189 = arith.addf %186, %188 : vector<8x128xf32>
      %c0_i32_80 = arith.constant 0 : i32
      %190 = vector.broadcast %c0_i32_80 : i32 to vector<8x1xi32>
      %191 = arith.cmpi eq, %185, %190 : vector<8x1xi32>
      %cst_81 = arith.constant 0.000000e+00 : f32
      %192 = vector.shape_cast %191 : vector<8x1xi1> to vector<8x1xi1>
      %193 = vector.broadcast %192 : vector<8x1xi1> to vector<8x128xi1>
      %194 = vector.broadcast %cst_81 : f32 to vector<8x128xf32>
      %195 = arith.select %193, %189, %194 : vector<8x128xi1>, vector<8x128xf32>
      %196 = vector.extract_strided_slice %168 {offsets = [0, 128], sizes = [8, 128], strides = [1, 1]} : vector<8x512xf32> to vector<8x128xf32>
      %c2_82 = arith.constant 2 : index
      %c0_83 = arith.constant 0 : index
      %197 = vector.load %arg6[%c2_82, %c0_83] : memref<11x128xf32, #tpu.memory_space<vmem>>, vector<1x128xf32>
      %198 = vector.broadcast %197 : vector<1x128xf32> to vector<8x128xf32>
      %199 = arith.addf %196, %198 : vector<8x128xf32>
      %c1_i32_84 = arith.constant 1 : i32
      %200 = vector.broadcast %c1_i32_84 : i32 to vector<8x1xi32>
      %201 = arith.cmpi eq, %185, %200 : vector<8x1xi32>
      %cst_85 = arith.constant 0.000000e+00 : f32
      %202 = vector.shape_cast %201 : vector<8x1xi1> to vector<8x1xi1>
      %203 = vector.broadcast %202 : vector<8x1xi1> to vector<8x128xi1>
      %204 = vector.broadcast %cst_85 : f32 to vector<8x128xf32>
      %205 = arith.select %203, %199, %204 : vector<8x128xi1>, vector<8x128xf32>
      %206 = arith.addf %195, %205 : vector<8x128xf32>
      %207 = vector.extract_strided_slice %168 {offsets = [0, 256], sizes = [8, 128], strides = [1, 1]} : vector<8x512xf32> to vector<8x128xf32>
      %c3_86 = arith.constant 3 : index
      %c0_87 = arith.constant 0 : index
      %208 = vector.load %arg6[%c3_86, %c0_87] : memref<11x128xf32, #tpu.memory_space<vmem>>, vector<1x128xf32>
      %209 = vector.broadcast %208 : vector<1x128xf32> to vector<8x128xf32>
      %210 = arith.addf %207, %209 : vector<8x128xf32>
      %c2_i32 = arith.constant 2 : i32
      %211 = vector.broadcast %c2_i32 : i32 to vector<8x1xi32>
      %212 = arith.cmpi eq, %185, %211 : vector<8x1xi32>
      %cst_88 = arith.constant 0.000000e+00 : f32
      %213 = vector.shape_cast %212 : vector<8x1xi1> to vector<8x1xi1>
      %214 = vector.broadcast %213 : vector<8x1xi1> to vector<8x128xi1>
      %215 = vector.broadcast %cst_88 : f32 to vector<8x128xf32>
      %216 = arith.select %214, %210, %215 : vector<8x128xi1>, vector<8x128xf32>
      %217 = arith.addf %206, %216 : vector<8x128xf32>
      %218 = vector.extract_strided_slice %168 {offsets = [0, 384], sizes = [8, 128], strides = [1, 1]} : vector<8x512xf32> to vector<8x128xf32>
      %c4_89 = arith.constant 4 : index
      %c0_90 = arith.constant 0 : index
      %219 = vector.load %arg6[%c4_89, %c0_90] : memref<11x128xf32, #tpu.memory_space<vmem>>, vector<1x128xf32>
      %220 = vector.broadcast %219 : vector<1x128xf32> to vector<8x128xf32>
      %221 = arith.addf %218, %220 : vector<8x128xf32>
      %c3_i32_91 = arith.constant 3 : i32
      %222 = vector.broadcast %c3_i32_91 : i32 to vector<8x1xi32>
      %223 = arith.cmpi eq, %185, %222 : vector<8x1xi32>
      %cst_92 = arith.constant 0.000000e+00 : f32
      %224 = vector.shape_cast %223 : vector<8x1xi1> to vector<8x1xi1>
      %225 = vector.broadcast %224 : vector<8x1xi1> to vector<8x128xi1>
      %226 = vector.broadcast %cst_92 : f32 to vector<8x128xf32>
      %227 = arith.select %225, %221, %226 : vector<8x128xi1>, vector<8x128xf32>
      %228 = arith.addf %217, %227 : vector<8x128xf32>
      %c5_93 = arith.constant 5 : index
      %c0_94 = arith.constant 0 : index
      %229 = vector.load %arg6[%c5_93, %c0_94] : memref<11x128xf32, #tpu.memory_space<vmem>>, vector<1x128xf32>
      %c6 = arith.constant 6 : index
      %c0_95 = arith.constant 0 : index
      %230 = vector.load %arg6[%c6, %c0_95] : memref<11x128xf32, #tpu.memory_space<vmem>>, vector<1x128xf32>
      %cst_96 = arith.constant dense<0.000000e+00> : vector<8xf32>
      %231 = vector.multi_reduction <add>, %228, %cst_96 [1] : vector<8x128xf32> to vector<8xf32>
      %232 = vector.shape_cast %231 : vector<8xf32> to vector<8x1xf32>
      %cst_97 = arith.constant 1.280000e+02 : f32
      %233 = vector.broadcast %cst_97 : f32 to vector<8x1xf32>
      %234 = arith.divf %232, %233 : vector<8x1xf32>
      %235 = vector.broadcast %234 : vector<8x1xf32> to vector<8x128xf32>
      %236 = arith.subf %228, %235 : vector<8x128xf32>
      %237 = arith.mulf %236, %236 : vector<8x128xf32>
      %cst_98 = arith.constant dense<0.000000e+00> : vector<8xf32>
      %238 = vector.multi_reduction <add>, %237, %cst_98 [1] : vector<8x128xf32> to vector<8xf32>
      %239 = vector.shape_cast %238 : vector<8xf32> to vector<8x1xf32>
      %cst_99 = arith.constant 1.280000e+02 : f32
      %240 = vector.broadcast %cst_99 : f32 to vector<8x1xf32>
      %241 = arith.divf %239, %240 : vector<8x1xf32>
      %242 = vector.broadcast %234 : vector<8x1xf32> to vector<8x128xf32>
      %243 = arith.subf %228, %242 : vector<8x128xf32>
      %cst_100 = arith.constant 9.99999974E-6 : f32
      %244 = vector.broadcast %cst_100 : f32 to vector<8x1xf32>
      %245 = arith.addf %241, %244 : vector<8x1xf32>
      %246 = math.rsqrt %245 : vector<8x1xf32>
      %247 = vector.broadcast %246 : vector<8x1xf32> to vector<8x128xf32>
      %248 = arith.mulf %243, %247 : vector<8x128xf32>
      %249 = vector.broadcast %229 : vector<1x128xf32> to vector<8x128xf32>
      %250 = arith.mulf %248, %249 : vector<8x128xf32>
      %251 = vector.broadcast %230 : vector<1x128xf32> to vector<8x128xf32>
      %252 = arith.addf %250, %251 : vector<8x128xf32>
      %c0_101 = arith.constant 0 : index
      %c0_102 = arith.constant 0 : index
      %253 = vector.load %arg11[%c0_101, %c0_102] : memref<8x128xf32, #tpu.memory_space<vmem>>, vector<8x128xf32>
      tpu.vector_store %arg11[%c0_101, %c0_102], %252 {strides = array<i32>} : memref<8x128xf32, #tpu.memory_space<vmem>>, vector<8x128xf32>,
      %c0_103 = arith.constant 0 : index
      %c0_104 = arith.constant 0 : index
      %254 = vector.load %arg12[%c0_103, %c0_104] : memref<8x128xf32, #tpu.memory_space<vmem>>, vector<8x128xf32>
      tpu.vector_store %arg12[%c0_103, %c0_104], %252 {strides = array<i32>} : memref<8x128xf32, #tpu.memory_space<vmem>>, vector<8x128xf32>,
      %c0_105 = arith.constant 0 : index
      %c0_106 = arith.constant 0 : index
      %255 = vector.load %arg3[%c0_105, %c0_106] : memref<16x256xf32, #tpu.memory_space<vmem>>, vector<16x256xf32>
      %256 = arith.truncf %255 : vector<16x256xf32> to vector<16x256xbf16>
      %c64 = arith.constant 64 : index
      %c0_107 = arith.constant 0 : index
      %257 = vector.load %arg4[%c64, %c0_107] : memref<448x128xbf16, #tpu.memory_space<vmem>>, vector<256x128xbf16>
      %cst_108 = arith.constant dense<0.000000e+00> : vector<16x128xf32>
      %258 = tpu.matmul %256, %257, %cst_108 {dimension_numbers = #tpu.dot_dimension_numbers<[1], [0], [0], [1], [0, 0, 1, 1], [], []>} : vector<16x256xbf16>, vector<256x128xbf16>, vector<16x128xf32> -> vector<16x128xf32>
      %c7 = arith.constant 7 : index
      %c0_109 = arith.constant 0 : index
      %259 = vector.load %arg6[%c7, %c0_109] : memref<11x128xf32, #tpu.memory_space<vmem>>, vector<1x128xf32>
      %260 = vector.broadcast %259 : vector<1x128xf32> to vector<16x128xf32>
      %261 = arith.addf %258, %260 : vector<16x128xf32>
      %c0_110 = arith.constant 0 : index
      %c0_111 = arith.constant 0 : index
      %262 = vector.load %arg13[%c0_110, %c0_111] : memref<16x128xf32, #tpu.memory_space<vmem>>, vector<16x128xf32>
      tpu.vector_store %arg13[%c0_110, %c0_111], %261 {strides = array<i32>} : memref<16x128xf32, #tpu.memory_space<vmem>>, vector<16x128xf32>,
    } else {
    }
    %c0 = arith.constant 0 : index
    %c0_1 = arith.constant 0 : index
    %3 = vector.load %arg12[%c0, %c0_1] : memref<8x128xf32, #tpu.memory_space<vmem>>, vector<8x128xf32>
    %c0_2 = arith.constant 0 : index
    %c0_3 = arith.constant 0 : index
    %4 = vector.load %arg13[%c0_2, %c0_3] : memref<16x128xf32, #tpu.memory_space<vmem>>, vector<16x128xf32>
    %c0_4 = arith.constant 0 : index
    %c0_5 = arith.constant 0 : index
    %c0_6 = arith.constant 0 : index
    %5 = vector.load %arg9[%c0_4, %c0_5, %c0_6] : memref<1x6x128xf32, #tpu.memory_space<vmem>>, vector<1x1x128xf32>
    %6 = vector.shape_cast %5 : vector<1x1x128xf32> to vector<1x128xf32>
    %c0_7 = arith.constant 0 : index
    %c1 = arith.constant 1 : index
    %c0_8 = arith.constant 0 : index
    %7 = vector.load %arg9[%c0_7, %c1, %c0_8] : memref<1x6x128xf32, #tpu.memory_space<vmem>>, vector<1x1x128xf32>
    %8 = vector.shape_cast %7 : vector<1x1x128xf32> to vector<1x128xf32>
    %cst = arith.constant dense<0.000000e+00> : vector<16xf32>
    %9 = vector.multi_reduction <add>, %4, %cst [1] : vector<16x128xf32> to vector<16xf32>
    %10 = vector.shape_cast %9 : vector<16xf32> to vector<16x1xf32>
    %cst_9 = arith.constant 1.280000e+02 : f32
    %11 = vector.broadcast %cst_9 : f32 to vector<16x1xf32>
    %12 = arith.divf %10, %11 : vector<16x1xf32>
    %13 = vector.broadcast %12 : vector<16x1xf32> to vector<16x128xf32>
    %14 = arith.subf %4, %13 : vector<16x128xf32>
    %15 = arith.mulf %14, %14 : vector<16x128xf32>
    %cst_10 = arith.constant dense<0.000000e+00> : vector<16xf32>
    %16 = vector.multi_reduction <add>, %15, %cst_10 [1] : vector<16x128xf32> to vector<16xf32>
    %17 = vector.shape_cast %16 : vector<16xf32> to vector<16x1xf32>
    %cst_11 = arith.constant 1.280000e+02 : f32
    %18 = vector.broadcast %cst_11 : f32 to vector<16x1xf32>
    %19 = arith.divf %17, %18 : vector<16x1xf32>
    %20 = vector.broadcast %12 : vector<16x1xf32> to vector<16x128xf32>
    %21 = arith.subf %4, %20 : vector<16x128xf32>
    %cst_12 = arith.constant 9.99999974E-6 : f32
    %22 = vector.broadcast %cst_12 : f32 to vector<16x1xf32>
    %23 = arith.addf %19, %22 : vector<16x1xf32>
    %24 = math.rsqrt %23 : vector<16x1xf32>
    %25 = vector.broadcast %24 : vector<16x1xf32> to vector<16x128xf32>
    %26 = arith.mulf %21, %25 : vector<16x128xf32>
    %27 = vector.broadcast %6 : vector<1x128xf32> to vector<16x128xf32>
    %28 = arith.mulf %26, %27 : vector<16x128xf32>
    %29 = vector.broadcast %8 : vector<1x128xf32> to vector<16x128xf32>
    %30 = arith.addf %28, %29 : vector<16x128xf32>
    %c0_13 = arith.constant 0 : index
    %c2 = arith.constant 2 : index
    %c0_14 = arith.constant 0 : index
    %31 = vector.load %arg9[%c0_13, %c2, %c0_14] : memref<1x6x128xf32, #tpu.memory_space<vmem>>, vector<1x1x128xf32>
    %32 = vector.shape_cast %31 : vector<1x1x128xf32> to vector<1x128xf32>
    %c0_15 = arith.constant 0 : index
    %c3 = arith.constant 3 : index
    %c0_16 = arith.constant 0 : index
    %33 = vector.load %arg9[%c0_15, %c3, %c0_16] : memref<1x6x128xf32, #tpu.memory_space<vmem>>, vector<1x1x128xf32>
    %34 = vector.shape_cast %33 : vector<1x1x128xf32> to vector<1x128xf32>
    %cst_17 = arith.constant dense<0.000000e+00> : vector<8xf32>
    %35 = vector.multi_reduction <add>, %3, %cst_17 [1] : vector<8x128xf32> to vector<8xf32>
    %36 = vector.shape_cast %35 : vector<8xf32> to vector<8x1xf32>
    %cst_18 = arith.constant 1.280000e+02 : f32
    %37 = vector.broadcast %cst_18 : f32 to vector<8x1xf32>
    %38 = arith.divf %36, %37 : vector<8x1xf32>
    %39 = vector.broadcast %38 : vector<8x1xf32> to vector<8x128xf32>
    %40 = arith.subf %3, %39 : vector<8x128xf32>
    %41 = arith.mulf %40, %40 : vector<8x128xf32>
    %cst_19 = arith.constant dense<0.000000e+00> : vector<8xf32>
    %42 = vector.multi_reduction <add>, %41, %cst_19 [1] : vector<8x128xf32> to vector<8xf32>
    %43 = vector.shape_cast %42 : vector<8xf32> to vector<8x1xf32>
    %cst_20 = arith.constant 1.280000e+02 : f32
    %44 = vector.broadcast %cst_20 : f32 to vector<8x1xf32>
    %45 = arith.divf %43, %44 : vector<8x1xf32>
    %46 = vector.broadcast %38 : vector<8x1xf32> to vector<8x128xf32>
    %47 = arith.subf %3, %46 : vector<8x128xf32>
    %cst_21 = arith.constant 9.99999974E-6 : f32
    %48 = vector.broadcast %cst_21 : f32 to vector<8x1xf32>
    %49 = arith.addf %45, %48 : vector<8x1xf32>
    %50 = math.rsqrt %49 : vector<8x1xf32>
    %51 = vector.broadcast %50 : vector<8x1xf32> to vector<8x128xf32>
    %52 = arith.mulf %47, %51 : vector<8x128xf32>
    %53 = vector.broadcast %32 : vector<1x128xf32> to vector<8x128xf32>
    %54 = arith.mulf %52, %53 : vector<8x128xf32>
    %55 = vector.broadcast %34 : vector<1x128xf32> to vector<8x128xf32>
    %56 = arith.addf %54, %55 : vector<8x128xf32>
    %57 = tpu.concatenate %30, %56 in 0 : vector<16x128xf32>, vector<8x128xf32> -> vector<24x128xf32>
    %58 = arith.truncf %57 : vector<24x128xf32> to vector<24x128xbf16>
    %c0_22 = arith.constant 0 : index
    %c0_23 = arith.constant 0 : index
    %c0_24 = arith.constant 0 : index
    %59 = vector.load %arg7[%c0_22, %c0_23, %c0_24] : memref<1x256x512xbf16, #tpu.memory_space<vmem>>, vector<1x128x384xbf16>
    %60 = vector.shape_cast %59 : vector<1x128x384xbf16> to vector<128x384xbf16>
    %cst_25 = arith.constant dense<0.000000e+00> : vector<24x384xf32>
    %61 = tpu.matmul %58, %60, %cst_25 {dimension_numbers = #tpu.dot_dimension_numbers<[1], [0], [0], [1], [0, 0, 1, 1], [], []>} : vector<24x128xbf16>, vector<128x384xbf16>, vector<24x384xf32> -> vector<24x384xf32>
    %62 = vector.extract_strided_slice %61 {offsets = [16, 0], sizes = [8, 128], strides = [1, 1]} : vector<24x384xf32> to vector<8x128xf32>
    %63 = vector.extract_strided_slice %61 {offsets = [0, 128], sizes = [24, 128], strides = [1, 1]} : vector<24x384xf32> to vector<24x128xf32>
    %64 = vector.extract_strided_slice %61 {offsets = [0, 256], sizes = [24, 128], strides = [1, 1]} : vector<24x384xf32> to vector<24x128xf32>
    %c0_26 = arith.constant 0 : index
    %c0_27 = arith.constant 0 : index
    %65 = vector.load %arg1[%c0_26, %c0_27] : memref<8x24xf32, #tpu.memory_space<vmem>>, vector<8x24xf32>
    %66 = vector.extract_strided_slice %62 {offsets = [0, 0], sizes = [8, 64], strides = [1, 1]} : vector<8x128xf32> to vector<8x64xf32>
    %67 = vector.extract_strided_slice %63 {offsets = [0, 0], sizes = [24, 64], strides = [1, 1]} : vector<24x128xf32> to vector<24x64xf32>
    %cst_28 = arith.constant dense<0.000000e+00> : vector<8x24xf32>
    %68 = tpu.matmul %66, %67, %cst_28 {dimension_numbers = #tpu.dot_dimension_numbers<[1], [1], [0], [0], [0, 0, 1, 0], [], []>} : vector<8x64xf32>, vector<24x64xf32>, vector<8x24xf32> -> vector<8x24xf32>
    %69 = arith.addf %68, %65 : vector<8x24xf32>
    %cst_29 = arith.constant dense<0xFF800000> : vector<8xf32>
    %70 = vector.multi_reduction <maximumf>, %69, %cst_29 [1] : vector<8x24xf32> to vector<8xf32>
    %71 = vector.shape_cast %70 : vector<8xf32> to vector<8x1xf32>
    %72 = vector.broadcast %71 : vector<8x1xf32> to vector<8x24xf32>
    %73 = arith.subf %69, %72 : vector<8x24xf32>
    %74 = math.exp %73 : vector<8x24xf32>
    %cst_30 = arith.constant dense<0.000000e+00> : vector<8xf32>
    %75 = vector.multi_reduction <add>, %74, %cst_30 [1] : vector<8x24xf32> to vector<8xf32>
    %76 = vector.shape_cast %75 : vector<8xf32> to vector<8x1xf32>
    %77 = tpu.reciprocal %76 {approx = true} : vector<8x1xf32> -> vector<8x1xf32>
    %78 = vector.broadcast %77 : vector<8x1xf32> to vector<8x24xf32>
    %79 = arith.mulf %74, %78 : vector<8x24xf32>
    %80 = vector.extract_strided_slice %64 {offsets = [0, 0], sizes = [24, 64], strides = [1, 1]} : vector<24x128xf32> to vector<24x64xf32>
    %cst_31 = arith.constant dense<0.000000e+00> : vector<8x64xf32>
    %81 = tpu.matmul %79, %80, %cst_31 {dimension_numbers = #tpu.dot_dimension_numbers<[1], [0], [0], [1], [0, 0, 1, 1], [], []>} : vector<8x24xf32>, vector<24x64xf32>, vector<8x64xf32> -> vector<8x64xf32>
    %82 = vector.extract_strided_slice %62 {offsets = [0, 64], sizes = [8, 64], strides = [1, 1]} : vector<8x128xf32> to vector<8x64xf32>
    %83 = vector.extract_strided_slice %63 {offsets = [0, 64], sizes = [24, 64], strides = [1, 1]} : vector<24x128xf32> to vector<24x64xf32>
    %cst_32 = arith.constant dense<0.000000e+00> : vector<8x24xf32>
    %84 = tpu.matmul %82, %83, %cst_32 {dimension_numbers = #tpu.dot_dimension_numbers<[1], [1], [0], [0], [0, 0, 1, 0], [], []>} : vector<8x64xf32>, vector<24x64xf32>, vector<8x24xf32> -> vector<8x24xf32>
    %85 = arith.addf %84, %65 : vector<8x24xf32>
    %cst_33 = arith.constant dense<0xFF800000> : vector<8xf32>
    %86 = vector.multi_reduction <maximumf>, %85, %cst_33 [1] : vector<8x24xf32> to vector<8xf32>
    %87 = vector.shape_cast %86 : vector<8xf32> to vector<8x1xf32>
    %88 = vector.broadcast %87 : vector<8x1xf32> to vector<8x24xf32>
    %89 = arith.subf %85, %88 : vector<8x24xf32>
    %90 = math.exp %89 : vector<8x24xf32>
    %cst_34 = arith.constant dense<0.000000e+00> : vector<8xf32>
    %91 = vector.multi_reduction <add>, %90, %cst_34 [1] : vector<8x24xf32> to vector<8xf32>
    %92 = vector.shape_cast %91 : vector<8xf32> to vector<8x1xf32>
    %93 = tpu.reciprocal %92 {approx = true} : vector<8x1xf32> -> vector<8x1xf32>
    %94 = vector.broadcast %93 : vector<8x1xf32> to vector<8x24xf32>
    %95 = arith.mulf %90, %94 : vector<8x24xf32>
    %96 = vector.extract_strided_slice %64 {offsets = [0, 64], sizes = [24, 64], strides = [1, 1]} : vector<24x128xf32> to vector<24x64xf32>
    %cst_35 = arith.constant dense<0.000000e+00> : vector<8x64xf32>
    %97 = tpu.matmul %95, %96, %cst_35 {dimension_numbers = #tpu.dot_dimension_numbers<[1], [0], [0], [1], [0, 0, 1, 1], [], []>} : vector<8x24xf32>, vector<24x64xf32>, vector<8x64xf32> -> vector<8x64xf32>
    %98 = tpu.concatenate %81, %97 in 1 : vector<8x64xf32>, vector<8x64xf32> -> vector<8x128xf32>
    %99 = arith.truncf %98 : vector<8x128xf32> to vector<8x128xbf16>
    %c0_36 = arith.constant 0 : index
    %c0_37 = arith.constant 0 : index
    %c384 = arith.constant 384 : index
    %100 = vector.load %arg7[%c0_36, %c0_37, %c384] : memref<1x256x512xbf16, #tpu.memory_space<vmem>>, vector<1x128x128xbf16>
    %101 = vector.shape_cast %100 : vector<1x128x128xbf16> to vector<128x128xbf16>
    %cst_38 = arith.constant dense<0.000000e+00> : vector<8x128xf32>
    %102 = tpu.matmul %99, %101, %cst_38 {dimension_numbers = #tpu.dot_dimension_numbers<[1], [0], [0], [1], [0, 0, 1, 1], [], []>} : vector<8x128xbf16>, vector<128x128xbf16>, vector<8x128xf32> -> vector<8x128xf32>
    %103 = arith.addf %3, %102 : vector<8x128xf32>
    %c0_39 = arith.constant 0 : index
    %c4 = arith.constant 4 : index
    %c0_40 = arith.constant 0 : index
    %104 = vector.load %arg9[%c0_39, %c4, %c0_40] : memref<1x6x128xf32, #tpu.memory_space<vmem>>, vector<1x1x128xf32>
    %105 = vector.shape_cast %104 : vector<1x1x128xf32> to vector<1x128xf32>
    %c0_41 = arith.constant 0 : index
    %c5 = arith.constant 5 : index
    %c0_42 = arith.constant 0 : index
    %106 = vector.load %arg9[%c0_41, %c5, %c0_42] : memref<1x6x128xf32, #tpu.memory_space<vmem>>, vector<1x1x128xf32>
    %107 = vector.shape_cast %106 : vector<1x1x128xf32> to vector<1x128xf32>
    %cst_43 = arith.constant dense<0.000000e+00> : vector<8xf32>
    %108 = vector.multi_reduction <add>, %103, %cst_43 [1] : vector<8x128xf32> to vector<8xf32>
    %109 = vector.shape_cast %108 : vector<8xf32> to vector<8x1xf32>
    %cst_44 = arith.constant 1.280000e+02 : f32
    %110 = vector.broadcast %cst_44 : f32 to vector<8x1xf32>
    %111 = arith.divf %109, %110 : vector<8x1xf32>
    %112 = vector.broadcast %111 : vector<8x1xf32> to vector<8x128xf32>
    %113 = arith.subf %103, %112 : vector<8x128xf32>
    %114 = arith.mulf %113, %113 : vector<8x128xf32>
    %cst_45 = arith.constant dense<0.000000e+00> : vector<8xf32>
    %115 = vector.multi_reduction <add>, %114, %cst_45 [1] : vector<8x128xf32> to vector<8xf32>
    %116 = vector.shape_cast %115 : vector<8xf32> to vector<8x1xf32>
    %cst_46 = arith.constant 1.280000e+02 : f32
    %117 = vector.broadcast %cst_46 : f32 to vector<8x1xf32>
    %118 = arith.divf %116, %117 : vector<8x1xf32>
    %119 = vector.broadcast %111 : vector<8x1xf32> to vector<8x128xf32>
    %120 = arith.subf %103, %119 : vector<8x128xf32>
    %cst_47 = arith.constant 9.99999974E-6 : f32
    %121 = vector.broadcast %cst_47 : f32 to vector<8x1xf32>
    %122 = arith.addf %118, %121 : vector<8x1xf32>
    %123 = math.rsqrt %122 : vector<8x1xf32>
    %124 = vector.broadcast %123 : vector<8x1xf32> to vector<8x128xf32>
    %125 = arith.mulf %120, %124 : vector<8x128xf32>
    %126 = vector.broadcast %105 : vector<1x128xf32> to vector<8x128xf32>
    %127 = arith.mulf %125, %126 : vector<8x128xf32>
    %128 = vector.broadcast %107 : vector<1x128xf32> to vector<8x128xf32>
    %129 = arith.addf %127, %128 : vector<8x128xf32>
    %130 = arith.truncf %129 : vector<8x128xf32> to vector<8x128xbf16>
    %c0_48 = arith.constant 0 : index
    %c128 = arith.constant 128 : index
    %c0_49 = arith.constant 0 : index
    %131 = vector.load %arg7[%c0_48, %c128, %c0_49] : memref<1x256x512xbf16, #tpu.memory_space<vmem>>, vector<1x128x512xbf16>
    %132 = vector.shape_cast %131 : vector<1x128x512xbf16> to vector<128x512xbf16>
    %cst_50 = arith.constant dense<0.000000e+00> : vector<8x512xf32>
    %133 = tpu.matmul %130, %132, %cst_50 {dimension_numbers = #tpu.dot_dimension_numbers<[1], [0], [0], [1], [0, 0, 1, 1], [], []>} : vector<8x128xbf16>, vector<128x512xbf16>, vector<8x512xf32> -> vector<8x512xf32>
    %cst_51 = arith.constant 5.000000e-01 : f32
    %134 = vector.broadcast %cst_51 : f32 to vector<8x512xf32>
    %135 = arith.mulf %134, %133 : vector<8x512xf32>
    %cst_52 = arith.constant 0.707106769 : f32
    %136 = vector.broadcast %cst_52 : f32 to vector<8x512xf32>
    %137 = arith.mulf %133, %136 : vector<8x512xf32>
    %138 = math.erf %137 : vector<8x512xf32>
    %cst_53 = arith.constant 1.000000e+00 : f32
    %139 = vector.broadcast %cst_53 : f32 to vector<8x512xf32>
    %140 = arith.addf %139, %138 : vector<8x512xf32>
    %141 = arith.mulf %135, %140 : vector<8x512xf32>
    %142 = arith.truncf %141 : vector<8x512xf32> to vector<8x512xbf16>
    %c0_54 = arith.constant 0 : index
    %c0_55 = arith.constant 0 : index
    %c0_56 = arith.constant 0 : index
    %143 = vector.load %arg8[%c0_54, %c0_55, %c0_56] : memref<1x512x128xbf16, #tpu.memory_space<vmem>>, vector<1x512x128xbf16>
    %144 = vector.shape_cast %143 : vector<1x512x128xbf16> to vector<512x128xbf16>
    %cst_57 = arith.constant dense<0.000000e+00> : vector<8x128xf32>
    %145 = tpu.matmul %142, %144, %cst_57 {dimension_numbers = #tpu.dot_dimension_numbers<[1], [0], [0], [1], [0, 0, 1, 1], [], []>} : vector<8x512xbf16>, vector<512x128xbf16>, vector<8x128xf32> -> vector<8x128xf32>
    %146 = arith.addf %103, %145 : vector<8x128xf32>
    %c0_58 = arith.constant 0 : index
    %c0_59 = arith.constant 0 : index
    %147 = vector.load %arg12[%c0_58, %c0_59] : memref<8x128xf32, #tpu.memory_space<vmem>>, vector<8x128xf32>
    tpu.vector_store %arg12[%c0_58, %c0_59], %146 {strides = array<i32>} : memref<8x128xf32, #tpu.memory_space<vmem>>, vector<8x128xf32>,
    %c3_i32 = arith.constant 3 : i32
    %148 = arith.cmpi eq, %arg0, %c3_i32 : i32
    %149 = arith.extui %148 : i1 to i32
    %c0_i32_60 = arith.constant 0 : i32
    %150 = arith.cmpi ne, %149, %c0_i32_60 : i32
    scf.if %150 {
      %151 = arith.truncf %146 : vector<8x128xf32> to vector<8x128xbf16>
      %c320 = arith.constant 320 : index
      %c0_61 = arith.constant 0 : index
      %152 = vector.load %arg4[%c320, %c0_61] : memref<448x128xbf16, #tpu.memory_space<vmem>>, vector<128x128xbf16>
      %cst_62 = arith.constant dense<0.000000e+00> : vector<8x128xf32>
      %153 = tpu.matmul %151, %152, %cst_62 {dimension_numbers = #tpu.dot_dimension_numbers<[1], [0], [0], [1], [0, 0, 1, 1], [], []>} : vector<8x128xbf16>, vector<128x128xbf16>, vector<8x128xf32> -> vector<8x128xf32>
      %c8 = arith.constant 8 : index
      %c0_63 = arith.constant 0 : index
      %154 = vector.load %arg6[%c8, %c0_63] : memref<11x128xf32, #tpu.memory_space<vmem>>, vector<1x128xf32>
      %155 = vector.broadcast %154 : vector<1x128xf32> to vector<8x128xf32>
      %156 = arith.addf %153, %155 : vector<8x128xf32>
      %c9 = arith.constant 9 : index
      %c0_64 = arith.constant 0 : index
      %157 = vector.load %arg6[%c9, %c0_64] : memref<11x128xf32, #tpu.memory_space<vmem>>, vector<1x128xf32>
      %c10 = arith.constant 10 : index
      %c0_65 = arith.constant 0 : index
      %158 = vector.load %arg6[%c10, %c0_65] : memref<11x128xf32, #tpu.memory_space<vmem>>, vector<1x128xf32>
      %cst_66 = arith.constant dense<0.000000e+00> : vector<8xf32>
      %159 = vector.multi_reduction <add>, %156, %cst_66 [1] : vector<8x128xf32> to vector<8xf32>
      %160 = vector.shape_cast %159 : vector<8xf32> to vector<8x1xf32>
      %cst_67 = arith.constant 1.280000e+02 : f32
      %161 = vector.broadcast %cst_67 : f32 to vector<8x1xf32>
      %162 = arith.divf %160, %161 : vector<8x1xf32>
      %163 = vector.broadcast %162 : vector<8x1xf32> to vector<8x128xf32>
      %164 = arith.subf %156, %163 : vector<8x128xf32>
      %165 = arith.mulf %164, %164 : vector<8x128xf32>
      %cst_68 = arith.constant dense<0.000000e+00> : vector<8xf32>
      %166 = vector.multi_reduction <add>, %165, %cst_68 [1] : vector<8x128xf32> to vector<8xf32>
      %167 = vector.shape_cast %166 : vector<8xf32> to vector<8x1xf32>
      %cst_69 = arith.constant 1.280000e+02 : f32
      %168 = vector.broadcast %cst_69 : f32 to vector<8x1xf32>
      %169 = arith.divf %167, %168 : vector<8x1xf32>
      %170 = vector.broadcast %162 : vector<8x1xf32> to vector<8x128xf32>
      %171 = arith.subf %156, %170 : vector<8x128xf32>
      %cst_70 = arith.constant 9.99999974E-6 : f32
      %172 = vector.broadcast %cst_70 : f32 to vector<8x1xf32>
      %173 = arith.addf %169, %172 : vector<8x1xf32>
      %174 = math.rsqrt %173 : vector<8x1xf32>
      %175 = vector.broadcast %174 : vector<8x1xf32> to vector<8x128xf32>
      %176 = arith.mulf %171, %175 : vector<8x128xf32>
      %177 = vector.broadcast %157 : vector<1x128xf32> to vector<8x128xf32>
      %178 = arith.mulf %176, %177 : vector<8x128xf32>
      %179 = vector.broadcast %158 : vector<1x128xf32> to vector<8x128xf32>
      %180 = arith.addf %178, %179 : vector<8x128xf32>
      %c0_71 = arith.constant 0 : index
      %c0_72 = arith.constant 0 : index
      %181 = vector.load %arg10[%c0_71, %c0_72] : memref<8x128xf32, #tpu.memory_space<vmem>>, vector<8x128xf32>
      tpu.vector_store %arg10[%c0_71, %c0_72], %180 {strides = array<i32>} : memref<8x128xf32, #tpu.memory_space<vmem>>, vector<8x128xf32>,
    } else {
    }
    return
  }
  func.func @transform_0(%arg0: i32) -> (i32, i32) {
    %c0_i32 = arith.constant 0 : i32
    %c0_i32_0 = arith.constant 0 : i32
    %c0_i32_1 = arith.constant 0 : i32
    return %c0_i32, %c0_i32_0 : i32, i32
  }
  func.func @transform_1(%arg0: i32) -> (i32, i32) {
    %c0_i32 = arith.constant 0 : i32
    %c0_i32_0 = arith.constant 0 : i32
    %c0_i32_1 = arith.constant 0 : i32
    return %c0_i32, %c0_i32_0 : i32, i32
  }
  func.func @transform_2(%arg0: i32) -> (i32, i32) {
    %c0_i32 = arith.constant 0 : i32
    %c0_i32_0 = arith.constant 0 : i32
    %c0_i32_1 = arith.constant 0 : i32
    return %c0_i32, %c0_i32_0 : i32, i32
  }
  func.func @transform_3(%arg0: i32) -> (i32, i32) {
    %c0_i32 = arith.constant 0 : i32
    %c0_i32_0 = arith.constant 0 : i32
    %c0_i32_1 = arith.constant 0 : i32
    return %c0_i32, %c0_i32_0 : i32, i32
  }
  func.func @transform_4(%arg0: i32) -> (i32, i32) {
    %c0_i32 = arith.constant 0 : i32
    %c0_i32_0 = arith.constant 0 : i32
    %c0_i32_1 = arith.constant 0 : i32
    return %c0_i32, %c0_i32_0 : i32, i32
  }
  func.func @transform_5(%arg0: i32) -> (i32, i32) {
    %c0_i32 = arith.constant 0 : i32
    %c0_i32_0 = arith.constant 0 : i32
    %c0_i32_1 = arith.constant 0 : i32
    return %c0_i32, %c0_i32_0 : i32, i32
  }
  func.func @transform_6(%arg0: i32) -> (i32, i32, i32) {
    %c0_i32 = arith.constant 0 : i32
    %c0_i32_0 = arith.constant 0 : i32
    %c0_i32_1 = arith.constant 0 : i32
    return %arg0, %c0_i32, %c0_i32_0 : i32, i32, i32
  }
  func.func @transform_7(%arg0: i32) -> (i32, i32, i32) {
    %c0_i32 = arith.constant 0 : i32
    %c0_i32_0 = arith.constant 0 : i32
    %c0_i32_1 = arith.constant 0 : i32
    return %arg0, %c0_i32, %c0_i32_0 : i32, i32, i32
  }
  func.func @transform_8(%arg0: i32) -> (i32, i32, i32) {
    %c0_i32 = arith.constant 0 : i32
    %c0_i32_0 = arith.constant 0 : i32
    %c0_i32_1 = arith.constant 0 : i32
    return %arg0, %c0_i32, %c0_i32_0 : i32, i32, i32
  }
  func.func @transform_9(%arg0: i32) -> (i32, i32) {
    %c0_i32 = arith.constant 0 : i32
    %c0_i32_0 = arith.constant 0 : i32
    %c0_i32_1 = arith.constant 0 : i32
    return %c0_i32, %c0_i32_0 : i32, i32
  }
  func.func @transform_10(%arg0: i32) -> (i32, i32) {
    %c0_i32 = arith.constant 0 : i32
    %c0_i32_0 = arith.constant 0 : i32
    %c0_i32_1 = arith.constant 0 : i32
    return %c0_i32, %c0_i32_0 : i32, i32
  }
}

</mosaic_0001>

<bundles_post_ra>
// kernel: eq.8
= control target key start
LH: loop header
LB: loop body
LE: loop exit
PB: predicated region body
PF: predicated region fallthrough
CT: control target
= control target key end

     0   :  { %vm7_vm0 = vcmask 31744   ;;  %vm13_vm1 = vcmask 64544   ;;  %s39_s0 = inlined_call_operand.vmem [shape: s32[2,4], index: 0, kind: input, shape index: {}]   ;;  %s40_s1 = inlined_call_operand.vmem [shape: s32[8], index: 1, kind: output, shape index: {}]  }
   0x1   :  { %v4_v0 = vld [vmem:[%s39_s0] sm:$0x3]  ;;  %s22_s0 = smov 4  }
   0x2   :  { %5 = vst [vmem:[#allocation1] sm:$0x3] %v4_v0 }
   0x9   :  { %v10_v1 = vld [vmem:[#allocation1 + $0x1] sm:$0x1]   ;;  %v6_v2 = vld [vmem:[#allocation1] sm:$0x1]  }
   0xa   :  { %11 = vrot.lane.b32.xlu0 %v10_v1, %s22_s0  ;;  %8 = vst.msk [vmem:[#allocation0] sm:$0x1] %vm7_vm0, %v6_v2  }
  0x7c   :  { %v12_v3 = vpop.permute.xlu0 %11  }
  0x7d   :  { %14 = vst.msk [vmem:[#allocation0] sm:$0x1] %vm13_vm1, %v12_v3  }
  0x84   :  { %v18_v4 = vld [vmem:[#allocation0] sm:$0x1] }
  0x85   :  { %20 = vst [vmem:[%s40_s1] sm:$0x1] %v18_v4 }

// kernel: forward.1
= control target key start
LH: loop header
LB: loop body
LE: loop exit
PB: predicated region body
PF: predicated region fallthrough
CT: control target
= control target key end

     0   :  { %s4393_s0 = inlined_call_operand.vmem [shape: f32[8,24], index: 0, kind: input, shape index: {}]   ;;  %s4394_s1 = inlined_call_operand.vmem [shape: f32[8,64], index: 1, kind: input, shape index: {}]   ;;  %s4395_s2 = inlined_call_operand.vmem [shape: f32[16,256], index: 2, kind: input, shape index: {}]   ;;  %s4396_s3 = inlined_call_operand.hbm [shape: bf16[448,128], index: 3, kind: input, shape index: {}]   ;;  %s4397_s4 = inlined_call_operand.hbm [shape: bf16[128,512], index: 4, kind: input, shape index: {}]   ;;  %s4398_s5 = inlined_call_operand.vmem [shape: f32[11,128], index: 5, kind: input, shape index: {}]   ;;  %s4399_s6 = inlined_call_operand.hbm [shape: bf16[4,256,512], index: 6, kind: input, shape index: {}]   ;;  %s4400_s7 = inlined_call_operand.hbm [shape: bf16[4,512,128], index: 7, kind: input, shape index: {}]   ;;  %s4401_s8 = inlined_call_operand.vmem [shape: f32[4,6,128], index: 8, kind: input, shape index: {}]   ;;  %s4402_s9 = inlined_call_operand.hbm [shape: f32[8,128], index: 9, kind: output, shape index: {0}]   ;;  %s4403_s10 = inlined_call_operand.hbm [shape: f32[8,128], index: 10, kind: output, shape index: {1}]  }
   0x1   :  { %4417 = sst [smem:[#allocation21_spill]] %s4396_s3 }
   0x2   :  { %4418 = sst [smem:[#allocation22_spill]] %s4402_s9 }
   0x3   :  { %4419 = sst [smem:[#allocation23_spill]] %s4403_s10 }
   0x4   :  { %16 = vsyncpa [#allocation5], 0 }
   0x5   :  { %17 = vsyncpa [#allocation8], 0 }
   0x6   :  { %18 = vsyncpa [#allocation6], 0 }
   0x7   :  { %19 = vsyncpa [#allocation13], 0  ;;  %s3863_s13 = smov 0   ;;  %s3865_s14 = smov 0  }
   0x8   :  { %s3867_s15 = smov 0   ;;  %s3869_s16 = smov 0  }
   0x9 LB: > { %s3882_s17 = sadd.s32 4294967295, %s3786_s16   ;;  %s3885_s18 = sadd.s32 1, %s3786_s16   ;;  %s3786_s16 = sphi %s3869_s16, %s4448_s16   ;;  %s3782_s15 = sphi %s3867_s15, %s4452_s15   ;;  %s3778_s14 = sphi %s3865_s14, %s4451_s14   ;;  %s3774_s13 = sphi %s3863_s13, %s4450_s13  }
   0xa   : > { %4420 = sst [smem:[#allocation19_spill]] %s3885_s18  ;;  %s155_s19 = ssub.s32 %s3786_s16, %s3885_s18 }
   0xb   : > { %s158_s20 = sadd.s32 1, %s3782_s15  ;;  %p156_p0 = scmp.eq.s32.totalorder %s155_s19, 0 }
   0xc   : > { %p165_p1 = scmp.ne.s32.totalorder %s3782_s15, %s3778_s14  ;;  %p166_p2 = scmp.eq.s32.totalorder %s3786_s16, 0 }
   0xd   : > { %p171_p3 = scmp.ne.s32.totalorder %s3778_s14, %s3774_s13  ;;  %p4404_p5 = scmp.eq.s32.totalorder %s3882_s17, 0 }
   0xe   : > { %s3895_s21 = scalar_select %p156_p0, %s3782_s15, %s158_s20  }
   0xf   : > { %p3897_p4 = por %p166_p2, %p165_p1  ;;  %p2792_p6 = scmp.ge.s32.totalorder %s3786_s16, 1 }
  0x10   : > { %4421 = sst [smem:[#allocation20_spill]] %s3895_s21  ;;  %p276_p7 = scmp.lt.s32.totalorder %s3786_s16, 5 }
  0x11   : > { %p3906_p8 = por %p4404_p5, %p171_p3  ;;  %s3788_s25 = smov [#allocation4]  }
  0x12   : > { %p3911_p10 = pnand %p2792_p6, %p276_p7  ;;  %s297_s26 = sshll.u32 %s3788_s25, 4  ;;  %s298_s26 = int_to_ptr.vmem [resolvable:$true] %s297_s26 }
  0x13   : > { %s4423_s23 = scalar_select %p3906_p8, 1, 0 }
  0x14   : > { %s4424_s24 = scalar_select %p3911_p10, 1, 0 }
  0x15   : > { %p3259_p11 = pneg %p3911_p10  ;;  %p3275_p13 = scmp.lt.s32.totalorder %s3786_s16, 4 }
  0x16   : > { %s4427_s3 = sld [smem:[#allocation21_spill]] }
  0x17   : > { %p3919_p12 = pnand %p3259_p11, %p4404_p5  ;;  %p3926_p0 = pnand %p3275_p13, %p3897_p4 }
  0x19   : > { %s4426_s28 = scalar_select %p3926_p0, 1, 0 }
  0x1a   : > { %p4413_p2 = pneg %p3919_p12 }
  0x1c   : > { %s3568_s11 = scalar_lea.hbm %s4427_s3, 3584 }
  0x1d   : > { %p3569_p1 = scmp.ne.s32.totalorder %s4427_s3, %s3568_s11  ;;  %p3575_p4 = scmp.lt.u32.totalorder %s3568_s11, %s4427_s3 }
  0x1f   : > { %p3571_p3 = pnand %p4413_p2, %p3569_p1 }
  0x21   : > { %p3572_p6 = pneg %p3571_p3 }
  0x23   : > { %p3577_p7 = pnand %p3575_p4, %p3572_p6 }
  0x25   : > { %3580 = shalt.err (!%p3577_p7)
}
  0x26   : > { %s3581_s22 = scalar_lea.vmem %s298_s26, 3584  ;;  %p3589_p5 = scmp.lt.s32.totalorder %s298_s26, %s298_s26 }
  0x27   : > { %p3582_p11 = scmp.ne.s32.totalorder %s298_s26, %s3581_s22  ;;  %p3590_p8 = scmp.lt.s32.totalorder %s3581_s22, %s3581_s22 }
  0x29   : > { %p3584_p13 = pnand %p3582_p11, %p4413_p2  ;;  %p3591_p10 = por %p3590_p8, %p3589_p5 }
  0x2b   : > { %p3585_p9 = pneg %p3584_p13 }
  0x2d   : > { %p3592_p0 = pnand %p3591_p10, %p3585_p9 }
  0x2f   : > { %3595 = shalt.err (!%p3592_p0)
}
  0x30   : > { %s4412_s25 = smov 64   ;;  %s4414_s29 = smov 4  }
  0x31   : > { %3262 = dma.hbm_to_vmem [thread:$0]  (!%p3919_p12), %s4427_s3, 3584, %s298_s26, [#allocation5], %s4412_s25, %s4412_s25, %s4414_s29  }
  0x32   : > { %s327_s12 = sand.u32 1, %s3786_s16   ;;  %s329_s13 = sand.u32 1, %s3782_s15  }
  0x33   : > { %s2796_s19 = sshll.u32 %s329_s13, 9  ;;  %s3000_s20 = sshll.u32 %s3786_s16, 13 }
  0x34   : > { %s3963_s18 = scalar_lea.hbm %s4399_s6, %s3000_s20  ;;  %s331_s10 = scalar_lea.vmem [#allocation9], %s2796_s19 }
  0x35   : > { %s338_s9 = sshll.u32 %s331_s10, 4  ;;  %s3791_s30 = smov [#allocation7]   ;;  %s3965_s9 = int_to_ptr.vmem [resolvable:$true] %s338_s9 }
  0x36   : > { %s3967_s26 = sshll.u32 %s3791_s30, 4  ;;  %s3969_s11 = scalar_lea.sflag [#allocation5], %s327_s12  ;;  %s311_s26 = int_to_ptr.vmem [resolvable:$true] %s3967_s26 }
  0x37   : > { %s3596_s25 = scalar_lea.hbm %s3963_s18, 8192  ;;  %p4428_p8 = scmp.ne.s32.totalorder %s4426_s28, 0 }
  0x38   : > { %p3597_p5 = scmp.ne.s32.totalorder %s3963_s18, %s3596_s25  ;;  %s3601_s19 = scalar_lea.hbm %s4399_s6, 32768 }
  0x39   : > { %p4415_p9 = pneg %p4428_p8  ;;  %p3602_p1 = scmp.lt.u32.totalorder %s3963_s18, %s4399_s6 }
  0x3a   : > { %p3603_p3 = scmp.lt.u32.totalorder %s3601_s19, %s3596_s25  ;;  %p3605_p4 = scmp.lt.u32.totalorder %s3596_s25, %s3963_s18 }
  0x3b   : > { %p3599_p10 = pnand %p4415_p9, %p3597_p5 }
  0x3c   : > { %p3604_p6 = por %p3603_p3, %p3602_p1 }
  0x3d   : > { %p3600_p0 = pneg %p3599_p10 }
  0x3e   : > { %p3606_p7 = por %p3605_p4, %p3604_p6 }
  0x40   : > { %p3607_p11 = pnand %p3606_p7, %p3600_p0 }
  0x42   : > { %3610 = shalt.err (!%p3607_p11)
}
  0x43   : > { %s3611_s12 = scalar_lea.vmem %s3965_s9, 8192  ;;  %s3792_s30 = smov [#allocation9]  }
  0x44   : > { %p3612_p13 = scmp.ne.s32.totalorder %s3965_s9, %s3611_s12  ;;  %s3616_s21 = sshll.u32 %s3792_s30, 4  ;;  %s3617_s21 = int_to_ptr.vmem [resolvable:$false] %s3616_s21 }
  0x45   : > { %s3618_s20 = scalar_lea.vmem %s3617_s21, 16384  ;;  %p3619_p2 = scmp.lt.s32.totalorder %s3965_s9, %s3617_s21 }
  0x46   : > { %p3614_p5 = pnand %p3612_p13, %p4415_p9  ;;  %p3620_p1 = scmp.lt.s32.totalorder %s3618_s20, %s3611_s12 }
  0x48   : > { %p3615_p10 = pneg %p3614_p5  ;;  %p3621_p3 = por %p3620_p1, %p3619_p2 }
  0x4a   : > { %p3622_p6 = pnand %p3621_p3, %p3615_p10 }
  0x4c   : > { %3625 = shalt.err (!%p3622_p6)
}
  0x4d   : > { %s3793_s25 = smov 256   ;;  %s3794_s19 = smov 16  }
  0x4e   : > { %3269 = dma.hbm_to_vmem [thread:$0]  (!%p4428_p8), %s3963_s18, 8192, %s3965_s9, %s3969_s11, %s3793_s25, %s3793_s25, %s3794_s19  }
  0x4f   : > { %s2799_s10 = sshll.u32 %s329_s13, 8  ;;  %s3626_s12 = scalar_lea.hbm %s4397_s4, 4096 }
  0x50   : > { %p3627_p2 = scmp.ne.s32.totalorder %s4397_s4, %s3626_s12  ;;  %p4429_p0 = pneg %p3919_p12 }
  0x51   : > { %p3633_p11 = scmp.lt.u32.totalorder %s3626_s12, %s4397_s4 }
  0x52   : > { %p3629_p4 = pnand %p3627_p2, %p4429_p0 }
  0x54   : > { %p3630_p7 = pneg %p3629_p4 }
  0x56   : > { %p3635_p13 = pnand %p3633_p11, %p3630_p7 }
  0x58   : > { %3638 = shalt.err (!%p3635_p13)
}
  0x59   : > { %s3639_s9 = scalar_lea.vmem %s311_s26, 4096  ;;  %p4430_p10 = pmov %p4429_p0 }
  0x5a   : > { %p3640_p5 = scmp.ne.s32.totalorder %s311_s26, %s3639_s9  ;;  %p3647_p6 = scmp.lt.s32.totalorder %s311_s26, %s311_s26 }
  0x5b   : > { %p3648_p9 = scmp.lt.s32.totalorder %s3639_s9, %s3639_s9 }
  0x5c   : > { %p3642_p1 = pnand %p3640_p5, %p4430_p10 }
  0x5d   : > { %p3649_p8 = por %p3648_p9, %p3647_p6 }
  0x5e   : > { %p3643_p3 = pneg %p3642_p1 }
  0x60   : > { %p3650_p0 = pnand %p3649_p8, %p3643_p3 }
  0x62   : > { %3653 = shalt.err (!%p3650_p0)
}
  0x63   : > { %3265 = dma.hbm_to_vmem [thread:$0]  (!%p3919_p12), %s4397_s4, 4096, %s311_s26, [#allocation8], %s3793_s25, %s3793_s25, %s3794_s19  }
  0x64   : > { %s3001_s3 = sshll.u32 %s3786_s16, 12  ;;  %s352_s12 = scalar_lea.vmem [#allocation10], %s2799_s10 }
  0x65   : > { %s4024_s30 = scalar_lea.hbm %s4400_s7, %s3001_s3  ;;  %s359_s21 = sshll.u32 %s352_s12, 4  ;;  %s4026_s21 = int_to_ptr.vmem [resolvable:$true] %s359_s21 }
  0x66   : > { %s3654_s27 = scalar_lea.hbm %s4024_s30, 4096  ;;  %p4431_p9 = scmp.ne.s32.totalorder %s4426_s28, 0 }
  0x67   : > { %p3655_p8 = scmp.ne.s32.totalorder %s4024_s30, %s3654_s27  ;;  %s3659_s25 = scalar_lea.hbm %s4400_s7, 16384 }
  0x68   : > { %p4432_p2 = pneg %p4431_p9  ;;  %p3660_p7 = scmp.lt.u32.totalorder %s4024_s30, %s4400_s7 }
  0x69   : > { %p3661_p11 = scmp.lt.u32.totalorder %s3659_s25, %s3654_s27  ;;  %p3663_p5 = scmp.lt.u32.totalorder %s3654_s27, %s4024_s30 }
  0x6a   : > { %p3657_p4 = pnand %p3655_p8, %p4432_p2 }
  0x6b   : > { %p3662_p13 = por %p3661_p11, %p3660_p7 }
  0x6c   : > { %p3658_p12 = pneg %p3657_p4 }
  0x6d   : > { %p3664_p10 = por %p3663_p5, %p3662_p13 }
  0x6f   : > { %p3665_p1 = pnand %p3664_p10, %p3658_p12 }
  0x71   : > { %3668 = shalt.err (!%p3665_p1)
}
  0x72   : > { %s3669_s10 = scalar_lea.vmem %s4026_s21, 4096  ;;  %p4433_p6 = pmov %p4432_p2 }
  0x73   : > { %p3670_p3 = scmp.ne.s32.totalorder %s4026_s21, %s3669_s10  ;;  %s3795_s9 = smov [#allocation10]  }
  0x74   : > { %s3674_s18 = sshll.u32 %s3795_s9, 4  ;;  %s3675_s18 = int_to_ptr.vmem [resolvable:$false] %s3674_s18 }
  0x75   : > { %p3672_p0 = pnand %p3670_p3, %p4433_p6  ;;  %s3676_s13 = scalar_lea.vmem %s3675_s18, 8192 }
  0x76   : > { %p3677_p2 = scmp.lt.s32.totalorder %s4026_s21, %s3675_s18  ;;  %p3678_p4 = scmp.lt.s32.totalorder %s3676_s13, %s3669_s10 }
  0x77   : > { %p3673_p8 = pneg %p3672_p0 }
  0x78   : > { %p3679_p7 = por %p3678_p4, %p3677_p2 }
  0x7a   : > { %p3680_p11 = pnand %p3679_p7, %p3673_p8 }
  0x7c   : > { %3683 = shalt.err (!%p3680_p11)
}
  0x7d   : > { %s4434_s3 = smov 4   ;;  %s4435_s29 = smov 64  }
  0x7e   : > { %3272 = dma.hbm_to_vmem [thread:$0]  (!%p4431_p9), %s4024_s30, 4096, %s4026_s21, %s3969_s11, %s4435_s29, %s4435_s29, %s4434_s3  }
  0x7f   : > { %p4436_p12 = scmp.ne.s32.totalorder %s4424_s24, 0 }
  0x80   : > { %p4437_p13 = scmp.eq.s32.totalorder (!%p4436_p12), %s3882_s17, 0 }
  0x81   : > { %378 = sbr.rel (%p4436_p12) target bundleno = 4458 (0x116a), region = 56 }
  0x88   : > { %3753 = dma.done.wait (%p4437_p13), [#allocation5], 3584   ;;  %p4438_p5 = pmov %p4437_p13 }
  0x8a   : > { %3755 = vsyncadd (%p4438_p5), [#allocation5], 4294963712  ;;  %p4439_p10 = pmov %p4438_p5 }
  0x8b   : > { %p4440_p1 = pmov %p4438_p5 }
  0x8c   : > { %3757 = dma.done.wait (%p4439_p10), [#allocation8], 4096  }
  0x8d   : > { %3759 = vsyncadd (%p4440_p1), [#allocation8], 4294963200  ;;  %s388_s28 = sand.u32 1, %s3882_s17   ;;  %s390_s11 = sand.u32 1, %s3778_s14  }
  0x8e   : > { %s2805_s22 = sshll.u32 %s390_s11, 9  ;;  %s389_s24 = scalar_lea.sflag [#allocation5], %s388_s28 }
  0x8f   : > { %s4067_s30 = scalar_lea.vmem [#allocation9], %s2805_s22  ;;  %p4441_p9 = scmp.ne.s32.totalorder %s4423_s23, 0 }
  0x91   : > { %3761 = dma.done.wait (%p4441_p9), %s389_s24, 12288  }
  0x92   : > { %3763 = vsyncadd (%p4441_p9), %s389_s24, 4294955008  ;;  %s2806_s12 = sshll.u32 %s390_s11, 8  ;;  %p442_p3 = scmp.lt.s32.totalorder %s3882_s17, 3 }
  0x93   : > { %s4080_s19 = scalar_lea.vmem [#allocation10], %s2806_s12  ;;  %p4442_p6 = scmp.ne.s32.totalorder %s3882_s17, 0 }
  0x94   : > { %s443_s21 = scalar_select %p442_p3, %s3882_s17, 3 }
  0x95   : > { %450 = sbr.rel (%p4442_p6) target bundleno = 933 (0x3a5), region = 76  ;;  %v3332_v0 = vld [vmem:[#allocation4] sm:$0xff] (!%p4442_p6)   ;;  %v3796_v1 = vmov (!%p4442_p6), 0.0   ;;  %v3333_v2 = vld [vmem:[#allocation4 + $0x8] sm:$0xff] (!%p4442_p6)   ;;  %vm3797_vm0 = vmmov (!%p4442_p6), 0   ;;  %v3334_v4 = vld [vmem:[#allocation4 + $0x10] sm:$0xff] (!%p4442_p6)  }
  0x96   : > { %s2807_s27 = sshll.u32 %s443_s21, 3  ;;  %3117 = vmatprep.subr.bf16.mxu0 (!%p4442_p6), %v3796_v1  ;;  %3125 = vmatprep.mubr.msk.bf16.mxu0 (!%p4442_p6), %vm3797_vm0, %v3796_v1  ;;  %v3336_v3 = vld [vmem:[#allocation7 + $0x4] ss:$16 sps:$4 sm:$0xff] (!%p4442_p6)   ;;  %v3341_v5 = vld [vmem:[#allocation7] ss:$16 sps:$4 sm:$0xff] (!%p4442_p6)   ;;  %v3335_v7 = vld [vmem:[#allocation4 + $0x18] sm:$0xff] (!%p4442_p6)  }
  0x97   : > { %s4078_s25 = scalar_lea.vmem %s4401_s8, %s2807_s27  ;;  %3118 = vmatpush3.bf16.msra.mxu0 (!%p4442_p6), %v3332_v0  ;;  %732 = vmatprep.subr.bf16.mxu1 (!%p4442_p6), %v3336_v3  ;;  %v3342_v6 = vld [vmem:[#allocation7 + $0x24] ss:$16 sps:$4 sm:$0xff] (!%p4442_p6)   ;;  %v451_v8 = vld [vmem:[%s4394_s1] sm:$0xff] (!%p4442_p6)  ;;  %v3347_v9 = vld [vmem:[#allocation7 + $0x20] ss:$16 sps:$4 sm:$0xff] (!%p4442_p6)   ;;  %vm490_vm1 = vcmask (!%p4442_p6), 523264  }
  0x98   : > { %3119 = vmatprep.subr.bf16.mxu0 (!%p4442_p6), %v3796_v1  ;;  %733 = vmatpush1.bf16.msra.mxu1 (!%p4442_p6), %v3341_v5  ;;  %v3348_v10 = vld [vmem:[#allocation7 + $0x44] ss:$16 sps:$4 sm:$0xff] (!%p4442_p6)   ;;  %v3340_v11 = vld [vmem:[#allocation7 + $0xc] ss:$16 sps:$4 sm:$0xff] (!%p4442_p6)   ;;  %v3338_v12 = vld [vmem:[#allocation7 + $0x8] ss:$16 sps:$4 sm:$0xff] (!%p4442_p6)   ;;  %v452_v14 = vpack.c.bf16 (!%p4442_p6), %v451_v8, %v451_v8 }
  0x99   : > { %734 = vmatprep.subr.bf16.mxu1 (!%p4442_p6), %v3342_v6  ;;  %v3353_v13 = vld [vmem:[#allocation7 + $0x40] ss:$16 sps:$4 sm:$0xff] (!%p4442_p6)   ;;  %v3346_v15 = vld [vmem:[#allocation7 + $0x2c] ss:$16 sps:$4 sm:$0xff] (!%p4442_p6)   ;;  %v3344_v16 = vld [vmem:[#allocation7 + $0x28] ss:$16 sps:$4 sm:$0xff] (!%p4442_p6)  }
  0x9a   : > { %v3352_v17 = vld [vmem:[#allocation7 + $0x4c] ss:$16 sps:$4 sm:$0xff] (!%p4442_p6)   ;;  %v3350_v18 = vld [vmem:[#allocation7 + $0x48] ss:$16 sps:$4 sm:$0xff] (!%p4442_p6)   ;;  %v3354_v19 = vld [vmem:[#allocation7 + $0x64] ss:$16 sps:$4 sm:$0xff] (!%p4442_p6)  }
  0x9b   : > { %3120 = vmatpush3.bf16.msra.mxu0 (!%p4442_p6), %v3333_v2  ;;  %v3358_v20 = vld [vmem:[#allocation7 + $0x6c] ss:$16 sps:$4 sm:$0xff] (!%p4442_p6)   ;;  %v3356_v21 = vld [vmem:[#allocation7 + $0x68] ss:$16 sps:$4 sm:$0xff] (!%p4442_p6)   ;;  %v3359_v22 = vld [vmem:[#allocation7 + $0x60] ss:$16 sps:$4 sm:$0xff] (!%p4442_p6)  }
  0x9c   : > { %3121 = vmatprep.subr.bf16.mxu0 %v3796_v1  ;;  %735 = vmatpush1.bf16.msra.mxu1 %v3347_v9  ;;  %v3360_v23 = vld [vmem:[#allocation7 + $0x84] ss:$16 sps:$4 sm:$0xff]   ;;  %v3364_v24 = vld [vmem:[#allocation7 + $0x8c] ss:$16 sps:$4 sm:$0xff]   ;;  %v3362_v25 = vld [vmem:[#allocation7 + $0x88] ss:$16 sps:$4 sm:$0xff]  }
  0x9d   : > { %736 = vmatprep.subr.bf16.mxu1 %v3348_v10  ;;  %v3365_v26 = vld [vmem:[#allocation7 + $0x80] ss:$16 sps:$4 sm:$0xff]   ;;  %v3366_v27 = vld [vmem:[#allocation7 + $0xa4] ss:$16 sps:$4 sm:$0xff]   ;;  %v3370_v28 = vld [vmem:[#allocation7 + $0xac] ss:$16 sps:$4 sm:$0xff]   ;;  %v814_v10 = vlaneseq }
  0x9e   : > { %v3368_v29 = vld [vmem:[#allocation7 + $0xa8] ss:$16 sps:$4 sm:$0xff]   ;;  %v3371_v30 = vld [vmem:[#allocation7 + $0xa0] ss:$16 sps:$4 sm:$0xff]   ;;  %v3372_v31 = vld [vmem:[#allocation7 + $0xc4] ss:$16 sps:$4 sm:$0xff]  }
  0x9f   : > { %3122 = vmatpush3.bf16.msra.mxu0 %v3334_v4  ;;  %v3376_v32 = vld [vmem:[#allocation7 + $0xcc] ss:$16 sps:$4 sm:$0xff]   ;;  %v3374_v33 = vld [vmem:[#allocation7 + $0xc8] ss:$16 sps:$4 sm:$0xff]   ;;  %v3377_v34 = vld [vmem:[#allocation7 + $0xc0] ss:$16 sps:$4 sm:$0xff]  }
  0xa0   : > { %3123 = vmatprep.subr.bf16.mxu0 %v3796_v1  ;;  %737 = vmatpush1.bf16.msra.mxu1 %v3353_v13  ;;  %v3378_v35 = vld [vmem:[#allocation7 + $0xe4] ss:$16 sps:$4 sm:$0xff]   ;;  %v3380_v36 = vld [vmem:[#allocation7 + $0xe8] ss:$16 sps:$4 sm:$0xff]   ;;  %v3382_v37 = vld [vmem:[#allocation7 + $0xec] ss:$16 sps:$4 sm:$0xff]  }
  0xa1   : > { %738 = vmatprep.subr.bf16.mxu1 %v3354_v19  ;;  %v3383_v38 = vld [vmem:[#allocation7 + $0xe0] ss:$16 sps:$4 sm:$0xff]   ;;  %v3798_v39 = vmov 0   ;;  %v2809_v40 = vld [vmem:[%s4398_s5] ss:$0 sm:$0xff]  ;;  %v3390_v61 = vld [vmem:[#allocation4 + $0x78] sm:$0xff]  }
  0xa2   : > { %764 = vmatprep.mubr.bf16.mxu1 %v3798_v39  ;;  %v3384_v52 = vld [vmem:[#allocation4 + $0x60] sm:$0xff]   ;;  %v3386_v54 = vld [vmem:[#allocation4 + $0x68] sm:$0xff]   ;;  %v3388_v56 = vld [vmem:[#allocation4 + $0x70] sm:$0xff]  }
  0xa3   : > { %3124 = vmatpush3.bf16.msra.mxu0 %v3335_v7  ;;  %v3385_v53 = vld [vmem:[#allocation4 + $0x20] sm:$0xff]   ;;  %v3387_v55 = vld [vmem:[#allocation4 + $0x28] sm:$0xff]   ;;  %v898_v57 = vld [vmem:[%s4395_s2 + $0x8] sm:$0xff] }
  0xa4   : > { %773 = vmatprep.subr.bf16.mxu0 %v3340_v11  ;;  %739 = vmatpush1.bf16.msra.mxu1 %v3359_v22  ;;  %v900_v58 = vld [vmem:[%s4395_s2 + $0x18] sm:$0xff]  ;;  %v3389_v60 = vld [vmem:[#allocation4 + $0x30] sm:$0xff]   ;;  %v3391_v62 = vld [vmem:[#allocation4 + $0x38] sm:$0xff]   ;;  %v815_v11 = vshrl.u32 %v814_v10, 7 }
  0xa5   : > { %740 = vmatprep.subr.bf16.mxu1 %v3360_v23  ;;  %v902_v59 = vpack.c.bf16 %v900_v58, %v898_v57  ;;  %v3392_v63 = vld [vmem:[#allocation4 + $0x80] sm:$0xff]   ;;  %v3394_v1 = vld [vmem:[#allocation4 + $0x88] sm:$0xff]   ;;  %v3396_v3 = vld [vmem:[#allocation4 + $0x90] sm:$0xff]  }
  0xa6   : > { %3126 = vmatmul.mubr.msk.bf16.vlgmr.msra.gmra.mrb[0].mxu0 %vm490_vm1, %v452_v14  ;;  %v3393_v0 = vld [vmem:[#allocation4 + $0x40] sm:$0xff]   ;;  %v3395_v2 = vld [vmem:[#allocation4 + $0x48] sm:$0xff]   ;;  %v3397_v4 = vld [vmem:[#allocation4 + $0x50] sm:$0xff]  }
  0xa7   : > { %774 = vmatpush1.bf16.msra.mxu0 %v3338_v12  ;;  %805 = vmatprep.mubr.bf16.mxu0 %v3798_v39  ;;  %v3398_v5 = vld [vmem:[#allocation4 + $0x98] sm:$0xff]   ;;  %v897_v7 = vld [vmem:[%s4395_s2] sm:$0xff]  ;;  %v820_v12 = vand.u32 3, %v815_v11 }
  0xa8   : > { %775 = vmatprep.subr.bf16.mxu0 %v3346_v15  ;;  %741 = vmatpush1.bf16.msra.mxu1 %v3365_v26  ;;  %v3399_v6 = vld [vmem:[#allocation4 + $0x58] sm:$0xff]   ;;  %v2847_v13 = vld [vmem:[%s4398_s5 + $0x1] ss:$0 sm:$0xff]  ;;  %v2849_v14 = vld [vmem:[%s4398_s5 + $0x3] ss:$0 sm:$0xff] }
  0xa9   : > { %742 = vmatprep.subr.bf16.mxu1 %v3366_v27  ;;  %v899_v8 = vld [vmem:[%s4395_s2 + $0x10] sm:$0xff]  ;;  %v2848_v15 = vld [vmem:[%s4398_s5 + $0x2] ss:$0 sm:$0xff]  ;;  %vm834_vm2 = vcmp.eq.s32.totalorder %v820_v12, 0  ;;  %vm844_vm3 = vcmp.eq.s32.totalorder %v820_v12, 1  ;;  %vm855_vm4 = vcmp.eq.s32.totalorder %v820_v12, 2 }
  0xaa   : > { %v901_v9 = vpack.c.bf16 %v899_v8, %v897_v7  ;;  %vm866_vm5 = vcmp.eq.s32.totalorder %v820_v12, 3 }
  0xab   : > { %776 = vmatpush1.bf16.msra.mxu0 %v3344_v16 }
  0xac   : > { %777 = vmatprep.subr.bf16.mxu0 %v3352_v17  ;;  %743 = vmatpush1.bf16.msra.mxu1 %v3371_v30 }
  0xad   : > { %744 = vmatprep.subr.bf16.mxu1 %v3372_v31 }
  0xaf   : > { %778 = vmatpush1.bf16.msra.mxu0 %v3350_v18 }
  0xb0   : > { %779 = vmatprep.subr.bf16.mxu0 %v3358_v20  ;;  %745 = vmatpush1.bf16.msra.mxu1 %v3377_v34 }
  0xb1   : > { %746 = vmatprep.subr.bf16.mxu1 %v3378_v35 }
  0xb3   : > { %780 = vmatpush1.bf16.msra.mxu0 %v3356_v21  ;;  %v2850_v21 = vld [vmem:[%s4398_s5 + $0x4] ss:$0 sm:$0xff] }
  0xb4   : > { %781 = vmatprep.subr.bf16.mxu0 %v3364_v24  ;;  %747 = vmatpush1.bf16.msra.mxu1 %v3383_v38 }
  0xb5   : > { %3007 = vmatprep.subr.bf16.mxu1 %v3384_v52 }
  0xb7   : > { %782 = vmatpush1.bf16.msra.mxu0 %v3362_v25 }
  0xb8   : > { %783 = vmatprep.subr.bf16.mxu0 %v3370_v28 }
  0xbb   : > { %784 = vmatpush1.bf16.msra.mxu0 %v3368_v29 }
  0xbc   : > { %785 = vmatprep.subr.bf16.mxu0 %v3376_v32 }
  0xbf   : > { %786 = vmatpush1.bf16.msra.mxu0 %v3374_v33 }
  0xc0   : > { %787 = vmatprep.subr.bf16.mxu0 %v3382_v37 }
  0xc3   : > { %788 = vmatpush1.bf16.msra.mxu0 %v3380_v36 }
 0x179   : > { %v528_v41 = vpop.f32.mrb[0].mxu0 }
 0x17a   : > { %v529_v42 = vadd.f32 %v2809_v40, %v528_v41  ;;  %v3127_v43 = vpop.f32.mrb[1].mxu0 }
 0x17b   : > { %v531_v44 = vpop.f32.mrb[2].mxu0 }
 0x17c   : > { %v535_v45 = vmul.f32 0.70710677, %v529_v42  ;;  %v3128_v46 = vpop.f32.mrb[3].mxu0  ;;  %v534_v48 = vmul.f32 0.5, %v529_v42 }
 0x17d   : > { %v2853_v46 = vld [vmem:[%s4398_s5 + $0x7] ss:$0 sm:$0xff] }
 0x17e   : > { %3400 = verf.f32 %v535_v45 }
 0x188   : > { %v3401_v47 = vpop.eup %3400 }
 0x189   : > { %v537_v49 = vadd.f32 1.0, %v3401_v47 }
 0x18b   : > { %v538_v50 = vmul.f32 %v537_v49, %v534_v48 }
 0x18d   : > { %v539_v51 = vpack.c.bf16 %v538_v50, %v538_v50 }
 0x18f   : > { %765 = vmatmul.mubr.bf16.vlgmr.msra.gmra.mrb[0].mxu1 %v539_v51  ;;  %806 = vmatmul.mubr.bf16.vlgmr.msra.gmra.mrb[4].mxu0 %v539_v51 }
 0x190   : > { %3008 = vmatpush3.bf16.msra.mxu1 %v3385_v53  ;;  %1068 = vmatprep.mubr.bf16.mxu1 %v902_v59  ;;  %v2851_v53 = vld [vmem:[%s4398_s5 + $0x5] ss:$0 sm:$0xff] }
 0x191   : > { %3009 = vmatprep.subr.bf16.mxu1 %v3386_v54 }
 0x194   : > { %3010 = vmatpush3.bf16.msra.mxu1 %v3387_v55  ;;  %v2852_v55 = vld [vmem:[%s4398_s5 + $0x6] ss:$0 sm:$0xff] }
 0x195   : > { %3011 = vmatprep.subr.bf16.mxu1 %v3388_v56 }
 0x198   : > { %3012 = vmatpush3.bf16.msra.mxu1 %v3389_v60 }
 0x199   : > { %3013 = vmatprep.subr.bf16.mxu1 %v3390_v61 }
 0x19c   : > { %3014 = vmatpush3.bf16.msra.mxu1 %v3391_v62 }
 0x19d   : > { %3015 = vmatprep.subr.bf16.mxu1 %v3392_v63 }
 0x1a0   : > { %3016 = vmatpush3.bf16.msra.mxu1 %v3393_v0 }
 0x1a1   : > { %3017 = vmatprep.subr.bf16.mxu1 %v3394_v1 }
 0x1a4   : > { %3018 = vmatpush3.bf16.msra.mxu1 %v3395_v2 }
 0x1a5   : > { %3019 = vmatprep.subr.bf16.mxu1 %v3396_v3 }
 0x1a8   : > { %3020 = vmatpush3.bf16.msra.mxu1 %v3397_v4 }
 0x1a9   : > { %3021 = vmatprep.subr.bf16.mxu1 %v3398_v5 }
 0x1ac   : > { %3022 = vmatpush3.bf16.msra.mxu1 %v3399_v6 }
 0x1af   : > { %1069 = vmatmul.mubr.bf16.vlgmr.msra.gmra.mrb[4].mxu1 %v901_v9 }
 0x262   : > { %v766_v16 = vpop.f32.mrb[0].mxu1  ;;  %v807_v17 = vpop.f32.mrb[4].mxu0 }
 0x263   : > { %v833_v18 = vadd.f32 %v2847_v13, %v766_v16  ;;  %v768_v19 = vpop.f32.mrb[1].mxu1  ;;  %v809_v20 = vpop.f32.mrb[5].mxu0  ;;  %v854_v22 = vadd.f32 %v2849_v14, %v807_v17 }
 0x264   : > { %v843_v23 = vadd.f32 %v2848_v15, %v768_v19  ;;  %v770_v24 = vpop.f32.mrb[2].mxu1  ;;  %v811_v25 = vpop.f32.mrb[6].mxu0  ;;  %v865_v30 = vadd.f32 %v2850_v21, %v809_v20 }
 0x265   : > { %v837_v26 = vsel %vm834_vm2, %v833_v18, 0.0  ;;  %v771_v27 = vpop.f32.mrb[3].mxu1  ;;  %v812_v28 = vpop.f32.mrb[7].mxu0  ;;  %v858_v32 = vsel %vm855_vm4, %v854_v22, 0.0 }
 0x266   : > { %v847_v29 = vsel %vm844_vm3, %v843_v23, 0.0  ;;  %v869_v34 = vsel %vm866_vm5, %v865_v30, 0.0 }
 0x267   : > { %v848_v31 = vadd.f32 %v847_v29, %v837_v26 }
 0x269   : > { %v859_v33 = vadd.f32 %v858_v32, %v848_v31 }
 0x26b   : > { %v870_v35 = vadd.f32 %v869_v34, %v859_v33 }
 0x26d   : > { %873 = vadd.xlane.f32.xlu0 %v870_v35 }
 0x282   : > { %v3023_v40 = vpop.f32.mrb[4].mxu1 }
 0x283   : > { %v3024_v41 = vpop.f32.mrb[5].mxu1 }
 0x284   : > { %v3026_v42 = vpop.f32.mrb[6].mxu1  ;;  %v3025_v44 = vadd.f32 %v3024_v41, %v3023_v40 }
 0x285   : > { %v3027_v43 = vpop.f32.mrb[7].mxu1 }
 0x286   : > { %v3028_v45 = vadd.f32 %v3027_v43, %v3026_v42  ;;  %v1071_v47 = vadd.f32 %v3025_v44, %v2853_v46 }
 0x288   : > { %v1074_v48 = vadd.f32 %v3028_v45, %v2853_v46  ;;  %1077 = vst [vmem:[#allocation3] sm:$0xff] %v1071_v47 }
 0x28a   : > { %1078 = vst [vmem:[#allocation3 + $0x8] sm:$0xff] %v1074_v48 }
 0x2fa   : > { %v874_v36 = vpop.xlane.xlu0 %873 }
 0x2fb   : > { %v876_v37 = vmul.f32 0.0078125, %v874_v36 }
 0x2fd   : > { %v877_v38 = vsub.f32 %v870_v35, %v876_v37 }
 0x2ff   : > { %v878_v39 = vmul.f32 %v877_v38, %v877_v38 }
 0x301   : > { %879 = vadd.xlane.f32.xlu0 %v878_v39 }
 0x38e   : > { %v880_v49 = vpop.xlane.xlu0 %879 }
 0x38f   : > { %v881_v50 = vmul.f32 0.0078125, %v880_v49 }
 0x391   : > { %v882_v51 = vadd.f32 1e-05, %v881_v50 }
 0x393   : > { %3402 = vrsqrt.f32 %v882_v51 }
 0x39d   : > { %v3403_v52 = vpop.eup %3402 }
 0x39e   : > { %v884_v54 = vmul.f32 %v3403_v52, %v877_v38 }
 0x3a0   : > { %v889_v56 = vmul.f32 %v2851_v53, %v884_v54 }
 0x3a2   : > { %v894_v57 = vadd.f32 %v2852_v55, %v889_v56 }
 0x3a4   : > { %895 = vst [vmem:[#allocation12] sm:$0xff] %v894_v57  ;;  %896 = vst [vmem:[#allocation2] sm:$0xff] %v894_v57 }
 0x3a5 PF: > { %v1080_v58 = vld [vmem:[#allocation3] sm:$0xff]  ;;  %v1081_v59 = vld [vmem:[#allocation3 + $0x8] sm:$0xff]  ;;  %v3799_v29 = vmov 0   ;;  %v2870_v45 = vld [vmem:[%s4078_s25] ss:$0 sm:$0xff]  ;;  %vm3802_vm6 = vmmov 0  }
 0x3a6   : > { %1084 = vadd.xlane.f32.xlu0 %v1080_v58  ;;  %v3414_v61 = vld [vmem:[%s4067_s30 + $0x4] ss:$16 sps:$4 sm:$0xff]   ;;  %v3416_v62 = vld [vmem:[%s4067_s30] ss:$16 sps:$4 sm:$0xff]   ;;  %v3417_v63 = vld [vmem:[%s4067_s30 + $0x8] ss:$16 sps:$4 sm:$0xff]   ;;  %1336 = vmatprep.mubr.bf16.mxu0 %v3799_v29 }
 0x3a7   : > { %v3418_v0 = vld [vmem:[%s4067_s30 + $0x24] ss:$16 sps:$4 sm:$0xff]   ;;  %1304 = vmatprep.subr.bf16.mxu0 %v3414_v61  ;;  %3129 = vmatprep.subr.bf16.mxu1 %v3417_v63  ;;  %v3420_v13 = vld [vmem:[%s4067_s30 + $0x20] ss:$16 sps:$4 sm:$0xff]   ;;  %v3421_v14 = vld [vmem:[%s4067_s30 + $0x28] ss:$16 sps:$4 sm:$0xff]  }
 0x3a8   : > { %1305 = vmatpush1.bf16.msra.mxu0 %v3416_v62  ;;  %3130 = vmatpush3.bf16.msra.mxu1 %v3417_v63  ;;  %v3422_v15 = vld [vmem:[%s4067_s30 + $0x44] ss:$16 sps:$4 sm:$0xff]   ;;  %v3424_v16 = vld [vmem:[%s4067_s30 + $0x40] ss:$16 sps:$4 sm:$0xff]   ;;  %v3425_v17 = vld [vmem:[%s4067_s30 + $0x48] ss:$16 sps:$4 sm:$0xff]  }
 0x3a9   : > { %1306 = vmatprep.subr.bf16.mxu0 %v3418_v0  ;;  %3131 = vmatprep.subr.bf16.mxu1 %v3421_v14  ;;  %v3426_v18 = vld [vmem:[%s4067_s30 + $0x64] ss:$16 sps:$4 sm:$0xff]   ;;  %v3428_v19 = vld [vmem:[%s4067_s30 + $0x60] ss:$16 sps:$4 sm:$0xff]   ;;  %v3429_v20 = vld [vmem:[%s4067_s30 + $0x68] ss:$16 sps:$4 sm:$0xff]  }
 0x3aa   : > { %1086 = vadd.xlane.f32.xlu0 %v1081_v59  ;;  %v3430_v21 = vld [vmem:[%s4067_s30 + $0x84] ss:$16 sps:$4 sm:$0xff]   ;;  %v3432_v22 = vld [vmem:[%s4067_s30 + $0x80] ss:$16 sps:$4 sm:$0xff]   ;;  %v3433_v23 = vld [vmem:[%s4067_s30 + $0x88] ss:$16 sps:$4 sm:$0xff]  }
 0x3ab   : > { %v4123_v60 = vld [vmem:[#allocation2] sm:$0xff]  ;;  %v3434_v24 = vld [vmem:[%s4067_s30 + $0xa4] ss:$16 sps:$4 sm:$0xff]   ;;  %v3436_v26 = vld [vmem:[%s4067_s30 + $0xa0] ss:$16 sps:$4 sm:$0xff]   ;;  %v3800_v62 = vmov 0.0|0.0  }
 0x3ac   : > { %1121 = vadd.xlane.f32.xlu1 %v4123_v60  ;;  %1307 = vmatpush1.bf16.msra.mxu0 %v3420_v13  ;;  %v3437_v25 = vld [vmem:[%s4067_s30 + $0xa8] ss:$16 sps:$4 sm:$0xff]   ;;  %v3438_v27 = vld [vmem:[%s4067_s30 + $0xc4] ss:$16 sps:$4 sm:$0xff]   ;;  %v3440_v30 = vld [vmem:[%s4067_s30 + $0xc0] ss:$16 sps:$4 sm:$0xff]  }
 0x3ad   : > { %3132 = vmatpush3.bf16.msra.mxu1 %v3421_v14  ;;  %1308 = vmatprep.subr.bf16.mxu0 %v3422_v15  ;;  %v3441_v28 = vld [vmem:[%s4067_s30 + $0xc8] ss:$16 sps:$4 sm:$0xff]   ;;  %v3442_v31 = vld [vmem:[%s4067_s30 + $0xe4] ss:$16 sps:$4 sm:$0xff]   ;;  %v3444_v33 = vld [vmem:[%s4067_s30 + $0xe0] ss:$16 sps:$4 sm:$0xff]  }
 0x3ae   : > { %3133 = vmatprep.subr.bf16.mxu1 %v3425_v17  ;;  %v3445_v32 = vld [vmem:[%s4067_s30 + $0xe8] ss:$16 sps:$4 sm:$0xff]   ;;  %v3801_v63 = vmov 0.0   ;;  %vm1402_vm7 = vcmask 523264   ;;  %vm1485_vm9 = vcmask 195584   ;;  %s3803_s24 = smov 64  }
 0x3af   : > { %v2872_v50 = vld [vmem:[%s4078_s25 + $0x2] ss:$0 sm:$0xff]  ;;  %v2871_v51 = vld [vmem:[%s4078_s25 + $0x1] ss:$0 sm:$0xff]  ;;  %v2873_v54 = vld [vmem:[%s4078_s25 + $0x3] ss:$0 sm:$0xff] }
 0x3b0   : > { %1309 = vmatpush1.bf16.msra.mxu0 %v3424_v16  ;;  %vm4184_vm8 = vmpackc.low %vm1402_vm7, %vm1402_vm7  ;;  %p2982_p0 = scmp.ne.s32.totalorder %s3882_s17, 3 }
 0x3b1   : > { %3134 = vmatpush3.bf16.msra.mxu1 %v3425_v17  ;;  %1310 = vmatprep.subr.bf16.mxu0 %v3426_v18  ;;  %v1401_v17 = vld [vmem:[%s4393_s0] sm:$0xff]  ;;  %vm3805_vm10 = vmmov (!%p2982_p0), 0  }
 0x3b2   : > { %3135 = vmatprep.subr.bf16.mxu1 %v3429_v20 }
 0x3b4   : > { %1311 = vmatpush1.bf16.msra.mxu0 %v3428_v19 }
 0x3b5   : > { %3136 = vmatpush3.bf16.msra.mxu1 %v3429_v20  ;;  %1312 = vmatprep.subr.bf16.mxu0 %v3430_v21 }
 0x3b6   : > { %3137 = vmatprep.subr.bf16.mxu1 %v3433_v23 }
 0x3b8   : > { %1313 = vmatpush1.bf16.msra.mxu0 %v3432_v22 }
 0x3b9   : > { %3138 = vmatpush3.bf16.msra.mxu1 %v3433_v23  ;;  %1314 = vmatprep.subr.bf16.mxu0 %v3434_v24 }
 0x3ba   : > { %3139 = vmatprep.subr.bf16.mxu1 %v3437_v25 }
 0x3bc   : > { %1315 = vmatpush1.bf16.msra.mxu0 %v3436_v26 }
 0x3bd   : > { %3140 = vmatpush3.bf16.msra.mxu1 %v3437_v25  ;;  %1316 = vmatprep.subr.bf16.mxu0 %v3438_v27 }
 0x3be   : > { %3141 = vmatprep.subr.bf16.mxu1 %v3441_v28 }
 0x3c0   : > { %1317 = vmatpush1.bf16.msra.mxu0 %v3440_v30 }
 0x3c1   : > { %3142 = vmatpush3.bf16.msra.mxu1 %v3441_v28  ;;  %1318 = vmatprep.subr.bf16.mxu0 %v3442_v31 }
 0x3c2   : > { %3143 = vmatprep.subr.bf16.mxu1 %v3445_v32 }
 0x3c4   : > { %1319 = vmatpush1.bf16.msra.mxu0 %v3444_v33 }
 0x3c5   : > { %3144 = vmatpush3.bf16.msra.mxu1 %v3445_v32  ;;  %3185 = vmatprep.subr.bf16.mxu0 %v3801_v63 }
 0x3c6   : > { %3225 = vmatprep.subr.bf16.mxu1 %v3800_v62 }
 0x433   : > { %v1085_v1 = vpop.xlane.xlu0 %1084 }
 0x434   : > { %v1089_v3 = vmul.f32 0.0078125, %v1085_v1 }
 0x436   : > { %v4130_v5 = vsub.f32 %v1080_v58, %v1089_v3 }
 0x437   : > { %v1087_v7 = vpop.xlane.xlu0 %1086 }
 0x438   : > { %v1090_v8 = vmul.f32 0.0078125, %v1087_v7  ;;  %v1093_v9 = vmul.f32 %v4130_v5, %v4130_v5 }
 0x439   : > { %v1122_v2 = vpop.xlane.xlu1 %1121 }
 0x43a   : > { %v1123_v4 = vmul.f32 0.0078125, %v1122_v2  ;;  %v4137_v10 = vsub.f32 %v1081_v59, %v1090_v8  ;;  %1095 = vadd.xlane.f32.xlu1 %v1093_v9 }
 0x43c   : > { %v4133_v6 = vsub.f32 %v4123_v60, %v1123_v4  ;;  %v1094_v12 = vmul.f32 %v4137_v10, %v4137_v10 }
 0x43e   : > { %v1125_v11 = vmul.f32 %v4133_v6, %v4133_v6  ;;  %1097 = vadd.xlane.f32.xlu0 %v1094_v12 }
 0x440   : > { %1126 = vadd.xlane.f32.xlu1 %v1125_v11 }
 0x4c7   : > { %v1096_v34 = vpop.xlane.xlu1 %1095 }
 0x4c8   : > { %v1099_v35 = vmul.f32 0.0078125, %v1096_v34 }
 0x4ca   : > { %v1101_v36 = vadd.f32 1e-05, %v1099_v35 }
 0x4cb   : > { %v1098_v37 = vpop.xlane.xlu0 %1097 }
 0x4cc   : > { %3534 = vrsqrt.f32 %v1101_v36  ;;  %v1100_v39 = vmul.f32 0.0078125, %v1098_v37 }
 0x4cd   : > { %v1127_v38 = vpop.xlane.xlu1 %1126 }
 0x4ce   : > { %v1128_v40 = vmul.f32 0.0078125, %v1127_v38  ;;  %v1102_v41 = vadd.f32 1e-05, %v1100_v39 }
 0x4d0   : > { %v1129_v42 = vadd.f32 1e-05, %v1128_v40  ;;  %3536 = vrsqrt.f32 %v1102_v41 }
 0x4d2   : > { %3538 = vrsqrt.f32 %v1129_v42 }
 0x4d6   : > { %v3535_v43 = vpop.eup %3534 }
 0x4d7   : > { %v1105_v44 = vmul.f32 %v3535_v43, %v4130_v5 }
 0x4d9   : > { %v1111_v49 = vmul.f32 %v2870_v45, %v1105_v44 }
 0x4da   : > { %v3537_v46 = vpop.eup %3536 }
 0x4db   : > { %v1106_v48 = vmul.f32 %v3537_v46, %v4137_v10  ;;  %v1117_v56 = vadd.f32 %v2871_v51, %v1111_v49 }
 0x4dc   : > { %v3539_v47 = vpop.eup %3538 }
 0x4dd   : > { %v1131_v52 = vmul.f32 %v3539_v47, %v4133_v6  ;;  %v1112_v53 = vmul.f32 %v2870_v45, %v1106_v48 }
 0x4df   : > { %v1136_v55 = vmul.f32 %v2872_v50, %v1131_v52  ;;  %v1118_v57 = vadd.f32 %v2871_v51, %v1112_v53 }
 0x4e1   : > { %v1141_v58 = vadd.f32 %v2873_v54, %v1136_v55  ;;  %v1142_v59 = vpack.c.bf16 %v1118_v57, %v1117_v56  ;;  %v3446_v56 = vld [vmem:[%s4067_s30 + $0xc] ss:$16 sps:$4 sm:$0xff]  }
 0x4e2   : > { %v3447_v57 = vld [vmem:[%s4067_s30 + $0x2c] ss:$16 sps:$4 sm:$0xff]  }
 0x4e3   : > { %v1143_v61 = vpack.c.bf16 %v1141_v58, %v1141_v58  ;;  %1337 = vmatmul.mubr.bf16.vlgmr.msra.gmra.mrb[0].mxu0 %v1142_v59  ;;  %3145 = vmatprep.mubr.bf16.mxu1 %v1142_v59  ;;  %v3448_v58 = vld [vmem:[%s4067_s30 + $0x4c] ss:$16 sps:$4 sm:$0xff]  }
 0x4e4   : > { %1344 = vmatprep.mubr.bf16.mxu0 %v3799_v29  ;;  %3186 = vmatpush3.bf16.msra.mxu0 %v3446_v56  ;;  %v3449_v59 = vld [vmem:[%s4067_s30 + $0x6c] ss:$16 sps:$4 sm:$0xff]  }
 0x4e5   : > { %3146 = vmatmul.mubr.bf16.vlgmr.msra.gmra.mrb[0].mxu1 %v1143_v61  ;;  %3187 = vmatprep.subr.bf16.mxu0 %v3801_v63 }
 0x4e6   : > { %3155 = vmatprep.mubr.msk.f32.mxu1 %vm3802_vm6, %v3801_v63 }
 0x4e8   : > { %3188 = vmatpush3.bf16.msra.mxu0 %v3447_v57  ;;  %v3504_v57 = vld [vmem:[%s4080_s19] sm:$0xff]  }
 0x4e9   : > { %3189 = vmatprep.subr.bf16.mxu0 %v3801_v63 }
 0x4eb   : > { %1345 = vmatmul.mubr.bf16.gmra.mrb[4].mxu0 %v1143_v61  ;;  %v3450_v61 = vld [vmem:[%s4067_s30 + $0x8c] ss:$16 sps:$4 sm:$0xff]  }
 0x4ec   : > { %3201 = vmatprep.mubr.msk.bf16.mxu0 %vm3802_vm6, %v3801_v63  ;;  %3190 = vmatpush3.bf16.msra.mxu0 %v3448_v58  ;;  %v3505_v58 = vld [vmem:[%s4080_s19 + $0x80] sm:$0xff]  }
 0x4ed   : > { %3191 = vmatprep.subr.bf16.mxu0 %v3801_v63 }
 0x4f0   : > { %3192 = vmatpush3.bf16.msra.mxu0 %v3449_v59 }
 0x4f1   : > { %3193 = vmatprep.subr.bf16.mxu0 %v3801_v63 }
 0x4f4   : > { %3194 = vmatpush3.bf16.msra.mxu0 %v3450_v61  ;;  %v3506_v61 = vld [vmem:[%s4080_s19 + $0x48] sm:$0xff]  }
 0x4f5   : > { %3195 = vmatprep.subr.bf16.mxu0 %v3801_v63 }
 0x5b6   : > { %v1338_v0 = vpop.f32.mrb[0].mxu0 }
 0x5b7   : > { %v1339_v1 = vpop.f32.mrb[1].mxu0  ;;  %v3452_v0 = vld [vmem:[%s4067_s30 + $0xcc] ss:$16 sps:$4 sm:$0xff]  }
 0x5b8   : > { %v4178_v2 = vpop.f32.mrb[0].mxu1  ;;  %v1341_v3 = vpop.f32.mrb[2].mxu0 }
 0x5b9   : > { %v4180_v4 = vpop.f32.mrb[1].mxu1  ;;  %v1342_v5 = vpop.f32.mrb[3].mxu0 }
 0x5ba   : > { %v3148_v6 = vpop.f32.mrb[2].mxu1  ;;  %v3404_v8 = vpack.i.bf16 %v1342_v5, %v1339_v1  ;;  %v3226_v9 = vpack.c.bf16 %v1342_v5, %v1339_v1  ;;  %v3453_v1 = vld [vmem:[%s4067_s30 + $0xec] ss:$16 sps:$4 sm:$0xff]  }
 0x5bb   : > { %v4188_v10 = vpop.f32.mrb[3].mxu1 }
 0x5bc   : > { %v3409_v11 = vpack.i.bf16 %v4188_v10, %v4180_v4  ;;  %v3230_v12 = vpack.c.bf16 %v4188_v10, %v4180_v4  ;;  %3228 = vmatpush3.bf16.xpose.msk.msra.mxu1 %vm4184_vm8, %v3226_v9 }
 0x5bd   : > { %3153 = vmatprep.subr.mxu1 %v3801_v63 }
 0x5be   : > { %v1346_v13 = vpop.f32.mrb[4].mxu0 }
 0x5bf   : > { %v1348_v14 = vpop.f32.mrb[5].mxu0 }
 0x5c0   : > { %v1350_v15 = vpop.f32.mrb[6].mxu0 }
 0x5c1   : > { %v1351_v16 = vpop.f32.mrb[7].mxu0  ;;  %v3462_v15 = vld [vmem:[%s4067_s30 + $0x124] ss:$16 sps:$4 sm:$0xff]  }
 0x5c2   : > { %v3463_v16 = vld [vmem:[%s4067_s30 + $0x128] ss:$16 sps:$4 sm:$0xff]  }
 0x5c4   : > { %3154 = vmatpush3.xpose.msk.msra.mxu1 %vm1402_vm7, %v1348_v14 }
 0x5c5   : > { %3229 = vmatprep.subr.bf16.mxu1 %v3800_v62 }
 0x5c7   : > { %3156 = vmatmul.mubr.msk.f32.vlgmr.msra.gmra.mrb[4].mxu1 %vm1402_vm7, %v1346_v13 }
 0x5c8   : > { %3231 = vmatpush3.bf16.msra.mxu1 %v3230_v12  ;;  %3164 = vmatprep.mubr.msk.f32.mxu1 %vm3802_vm6, %v3801_v63  ;;  %v3456_v12 = vld [vmem:[%s4067_s30 + $0x104] ss:$16 sps:$4 sm:$0xff]  }
 0x5c9   : > { %3162 = vmatprep.subr.mxu1 %v3801_v63 }
 0x5cc   : > { %3163 = vmatpush3.msra.mxu1 %v4178_v2 }
 0x5cd   : > { %3232 = vmatprep.subr.bf16.mxu1 %v3800_v62 }
 0x69a   : > { %v1481_v18 = vpop.f32.mrb[4].mxu1 }
 0x69b   : > { %v1482_v19 = vadd.f32 %v1481_v18, %v1401_v17  ;;  %v3157_v20 = vpop.f32.mrb[5].mxu1  ;;  %v3471_v18 = vld [vmem:[%s4067_s30 + $0x14c] ss:$16 sps:$4 sm:$0xff]  }
 0x69c   : > { %v3469_v20 = vld [vmem:[%s4067_s30 + $0x148] ss:$16 sps:$4 sm:$0xff]  }
 0x69d   : > { %v1486_v21 = vsel %vm1485_vm9, %v1482_v19, -inf }
 0x69e   : > { %1487 = vmax.xlane.f32.xlu0 %v1486_v21 }
 0x6b4   : > { %3405 = vrot.lane.b32.xlu0 %v3404_v8, %s3803_s24 }
 0x72b   : > { %v1488_v22 = vpop.xlane.xlu0 %1487 }
 0x72c   : > { %v1489_v23 = vsub.f32 %v1482_v19, %v1488_v22  ;;  %v3466_v19 = vld [vmem:[%s4067_s30 + $0x140] ss:$16 sps:$4 sm:$0xff]  }
 0x72e   : > { %v1490_v24 = vmul.f32 1.442695, %v1489_v23 }
 0x72f   : > { %v3406_v28 = vpop.permute.xlu0 %3405 }
 0x730   : > { %3540 = vpow2.f32 %v1490_v24  ;;  %v3408_v30 = vunpack.i.h.bf16 %v3406_v28  ;;  %v3407_v31 = vunpack.i.l.bf16 %v3406_v28  ;;  %v3475_v28 = vld [vmem:[%s4067_s30 + $0x168] ss:$16 sps:$4 sm:$0xff]  }
 0x732   : > { %v3233_v34 = vpack.c.bf16 %v3408_v30, %v3407_v31  ;;  %v3480_v30 = vld [vmem:[%s4067_s30 + $0x184] ss:$16 sps:$4 sm:$0xff]   ;;  %v3483_v31 = vld [vmem:[%s4067_s30 + $0x18c] ss:$16 sps:$4 sm:$0xff]  }
 0x73a   : > { %v3541_v25 = vpop.eup %3540 }
 0x73b   : > { %v1492_v26 = vsel %vm1485_vm9, %v3541_v25, 0.0 }
 0x73c   : > { %1493 = vadd.xlane.f32.xlu1 %v1492_v26  ;;  %v3477_v26 = vld [vmem:[%s4067_s30 + $0x16c] ss:$16 sps:$4 sm:$0xff]  }
 0x74d   : > { %1576 = vrot.lane.b32.xlu1 %v1348_v14, %s3803_s24  ;;  %v3459_v14 = vld [vmem:[%s4067_s30 + $0x10c] ss:$16 sps:$4 sm:$0xff]  }
 0x751   : > { %1570 = vrot.lane.b32.xlu1 %v1346_v13, %s3803_s24  ;;  %v3457_v13 = vld [vmem:[%s4067_s30 + $0x108] ss:$16 sps:$4 sm:$0xff]  }
 0x7c9   : > { %v1494_v27 = vpop.xlane.xlu1 %1493 }
 0x7ca   : > { %3542 = vrcp.f32 %v1494_v27  ;;  %v3472_v27 = vld [vmem:[%s4067_s30 + $0x160] ss:$16 sps:$4 sm:$0xff]  }
 0x7cd   : > { %v1577_v35 = vpop.permute.xlu1 %1576 }
 0x7d1   : > { %v1571_v36 = vpop.permute.xlu1 %1570 }
 0x7d4   : > { %v3543_v32 = vpop.eup %3542 }
 0x7d5   : > { %v1496_v33 = vmul.f32 %v3543_v32, %v3541_v25  ;;  %v3474_v25 = vld [vmem:[%s4067_s30 + $0x164] ss:$16 sps:$4 sm:$0xff]   ;;  %v3478_v32 = vld [vmem:[%s4067_s30 + $0x180] ss:$16 sps:$4 sm:$0xff]  }
 0x7d7   : > { %3165 = vmatmul.mubr.msk.f32.vlgmr.msra.gmra.mrb[6].mxu1 %vm1485_vm9, %v1496_v33  ;;  %v3481_v33 = vld [vmem:[%s4067_s30 + $0x188] ss:$16 sps:$4 sm:$0xff]  }
 0x7d8   : > { %3235 = vmatpush3.bf16.xpose.msk.msra.mxu1 %vm4184_vm8, %v3233_v34  ;;  %3173 = vmatprep.mubr.msk.f32.mxu1 %vm3802_vm6, %v3801_v63  ;;  %v3486_v34 = vld [vmem:[%s4067_s30 + $0x1a4] ss:$16 sps:$4 sm:$0xff]  }
 0x7d9   : > { %3171 = vmatprep.subr.mxu1 %v3801_v63 }
 0x7e0   : > { %3172 = vmatpush3.xpose.msk.msra.mxu1 %vm1402_vm7, %v1577_v35  ;;  %v3489_v35 = vld [vmem:[%s4067_s30 + $0x1ac] ss:$16 sps:$4 sm:$0xff]  }
 0x7e1   : > { %3236 = vmatprep.subr.bf16.mxu1 %v3800_v62  ;;  %v3451_v62 = vld [vmem:[%s4067_s30 + $0xac] ss:$16 sps:$4 sm:$0xff]  }
 0x7e2   : > { %3196 = vmatpush3.bf16.msra.mxu0 %v3451_v62  ;;  %v3507_v62 = vld [vmem:[%s4080_s19 + $0xc8] sm:$0xff]  }
 0x7e3   : > { %3174 = vmatmul.mubr.msk.f32.vlgmr.msra.gmra.mrb[8].mxu1 %vm1402_vm7, %v1571_v36  ;;  %3197 = vmatprep.subr.bf16.mxu0 %v3801_v63  ;;  %v3484_v36 = vld [vmem:[%s4067_s30 + $0x1a0] ss:$16 sps:$4 sm:$0xff]  }
 0x7e4   : > { %3182 = vmatprep.mubr.msk.f32.mxu1 %vm3802_vm6, %v3801_v63 }
 0x7e6   : > { %3198 = vmatpush3.bf16.msra.mxu0 %v3452_v0  ;;  %v3508_v0 = vld [vmem:[%s4080_s19 + $0x8] sm:$0xff]  }
 0x7e7   : > { %3199 = vmatprep.subr.bf16.mxu0 %v3801_v63 }
 0x7ea   : > { %3200 = vmatpush3.bf16.msra.mxu0 %v3453_v1  ;;  %v3509_v1 = vld [vmem:[%s4080_s19 + $0x88] sm:$0xff]  }
 0x7eb   : > { %2120 = vmatprep.subr.bf16.mxu0 %v3459_v14  ;;  %v3522_v14 = vld [vmem:[%s4080_s19 + $0x68] sm:$0xff]  }
 0x8aa   : > { %v1566_v37 = vpop.f32.mrb[6].mxu1 }
 0x8ab   : > { %v3166_v38 = vpop.f32.mrb[7].mxu1 }
 0x8ac   : > { %v3492_v38 = vld [vmem:[%s4067_s30 + $0x1c4] ss:$16 sps:$4 sm:$0xff]  }
 0x8b6   : > { %v1652_v39 = vpop.f32.mrb[8].mxu1 }
 0x8b7   : > { %v1653_v40 = vadd.f32 %v1652_v39, %v1401_v17  ;;  %v3175_v41 = vpop.f32.mrb[9].mxu1  ;;  %v3468_v17 = vld [vmem:[%s4067_s30 + $0x144] ss:$16 sps:$4 sm:$0xff]   ;;  %v3495_v39 = vld [vmem:[%s4067_s30 + $0x1cc] ss:$16 sps:$4 sm:$0xff]  }
 0x8b8   : > { %v3493_v41 = vld [vmem:[%s4067_s30 + $0x1c8] ss:$16 sps:$4 sm:$0xff]  }
 0x8b9   : > { %v1656_v42 = vsel %vm1485_vm9, %v1653_v40, -inf }
 0x8ba   : > { %1657 = vmax.xlane.f32.xlu1 %v1656_v42  ;;  %v3498_v42 = vld [vmem:[%s4067_s30 + $0x1e4] ss:$16 sps:$4 sm:$0xff]  }
 0x8cb   : > { %1674 = vrot.lane.b32.xlu1 %v4178_v2, %s3803_s24 }
 0x947   : > { %v1658_v43 = vpop.xlane.xlu1 %1657 }
 0x948   : > { %v1659_v44 = vsub.f32 %v1653_v40, %v1658_v43  ;;  %v3490_v40 = vld [vmem:[%s4067_s30 + $0x1c0] ss:$16 sps:$4 sm:$0xff]  }
 0x949   : > { %v3496_v43 = vld [vmem:[%s4067_s30 + $0x1e0] ss:$16 sps:$4 sm:$0xff]  }
 0x94a   : > { %v1660_v45 = vmul.f32 1.442695, %v1659_v44  ;;  %v3499_v44 = vld [vmem:[%s4067_s30 + $0x1e8] ss:$16 sps:$4 sm:$0xff]  }
 0x94b   : > { %v1675_v54 = vpop.permute.xlu1 %1674 }
 0x94c   : > { %3544 = vpow2.f32 %v1660_v45  ;;  %v3501_v45 = vld [vmem:[%s4067_s30 + $0x1ec] ss:$16 sps:$4 sm:$0xff]  }
 0x956   : > { %v3545_v46 = vpop.eup %3544 }
 0x957   : > { %v1662_v47 = vsel %vm1485_vm9, %v3545_v46, 0.0 }
 0x958   : > { %1663 = vadd.xlane.f32.xlu0 %v1662_v47  ;;  %v3503_v47 = vld [vmem:[%s4080_s19 + $0xc0] sm:$0xff]  }
 0x96e   : > { %3410 = vrot.lane.b32.xlu0 %v3409_v11, %s3803_s24  ;;  %v3454_v11 = vld [vmem:[%s4067_s30 + $0x100] ss:$16 sps:$4 sm:$0xff]  }
 0x9e5   : > { %v1664_v48 = vpop.xlane.xlu0 %1663 }
 0x9e6   : > { %3546 = vrcp.f32 %v1664_v48 }
 0x9e9   : > { %v3411_v49 = vpop.permute.xlu0 %3410 }
 0x9ea   : > { %v3413_v50 = vunpack.i.h.bf16 %v3411_v49  ;;  %v3412_v51 = vunpack.i.l.bf16 %v3411_v49 }
 0x9ec   : > { %v3237_v52 = vpack.c.bf16 %v3413_v50, %v3412_v51 }
 0x9ee   : > { %3238 = vmatpush3.bf16.msra.mxu1 %v3237_v52  ;;  %v2916_v52 = vld [vmem:[%s4078_s25 + $0x4] ss:$0 sm:$0xff] }
 0x9ef   : > { %3180 = vmatprep.subr.mxu1 %v3801_v63 }
 0x9f0   : > { %v3547_v53 = vpop.eup %3546 }
 0x9f1   : > { %v1666_v55 = vmul.f32 %v3547_v53, %v3545_v46  ;;  %v3502_v46 = vld [vmem:[%s4080_s19 + $0x40] sm:$0xff]  }
 0x9f2   : > { %3181 = vmatpush3.msra.mxu1 %v1675_v54  ;;  %v2917_v54 = vld [vmem:[%s4078_s25 + $0x5] ss:$0 sm:$0xff] }
 0x9f3   : > { %3183 = vmatmul.mubr.msk.f32.vlgmr.msra.gmra.mrb[10].mxu1 %vm1485_vm9, %v1666_v55  ;;  %2079 = vmatprep.subr.bf16.mxu1 %v3456_v12  ;;  %v3520_v12 = vld [vmem:[%s4080_s19 + $0x20] sm:$0xff]  }
 0x9f4   : > { %2111 = vmatprep.mubr.bf16.mxu1 %v3799_v29  ;;  %2080 = vmatpush1.bf16.msra.mxu1 %v3454_v11  ;;  %v3519_v11 = vld [vmem:[%s4080_s19 + $0xe0] sm:$0xff]  }
 0x9f5   : > { %2081 = vmatprep.subr.bf16.mxu1 %v3462_v15  ;;  %v3523_v15 = vld [vmem:[%s4080_s19 + $0xe8] sm:$0xff]  }
 0xac6   : > { %v1748_v2 = vpop.f32.mrb[10].mxu1 }
 0xac7   : > { %1753 = vrot.lane.b32.xlu1 %v1748_v2, %s3803_s24  ;;  %v3184_v3 = vpop.f32.mrb[11].mxu1  ;;  %v3510_v2 = vld [vmem:[%s4080_s19 + $0x50] sm:$0xff]  }
 0xac8   : > { %v3511_v3 = vld [vmem:[%s4080_s19 + $0xd0] sm:$0xff]  }
 0xb39   : > { %v1754_v4 = vpop.permute.xlu1 %1753 }
 0xb3a   : > { %v1756_v5 = vsel %vm1402_vm7, %v1566_v37, %v1754_v4  ;;  %v3487_v37 = vld [vmem:[%s4067_s30 + $0x1a8] ss:$16 sps:$4 sm:$0xff]   ;;  %v3512_v4 = vld [vmem:[%s4080_s19 + $0x10] sm:$0xff]  }
 0xb3b   : > { %v1757_v6 = vpack.c.bf16 %v1756_v5, %v1756_v5  ;;  %v3513_v5 = vld [vmem:[%s4080_s19 + $0x90] sm:$0xff]  }
 0xb3d   : > { %3202 = vmatmul.mubr.bf16.vlgmr.msra.gmra.mrb[8].mxu0 %v1757_v6  ;;  %v3514_v6 = vld [vmem:[%s4080_s19 + $0x58] sm:$0xff]  }
 0xb3e   : > { %2152 = vmatprep.mubr.bf16.mxu0 %v3799_v29  ;;  %v3465_v29 = vld [vmem:[%s4067_s30 + $0x12c] ss:$16 sps:$4 sm:$0xff]   ;;  %2121 = vmatpush1.bf16.msra.mxu0 %v3457_v13  ;;  %v3521_v13 = vld [vmem:[%s4080_s19 + $0xa0] sm:$0xff]  }
 0xb3f   : > { %2122 = vmatprep.subr.bf16.mxu0 %v3465_v29  ;;  %v3524_v29 = vld [vmem:[%s4080_s19 + $0x28] sm:$0xff]  }
 0xb42   : > { %2123 = vmatpush1.bf16.msra.mxu0 %v3463_v16  ;;  %v3526_v16 = vld [vmem:[%s4080_s19 + $0x70] sm:$0xff]  }
 0xb43   : > { %2124 = vmatprep.subr.bf16.mxu0 %v3471_v18  ;;  %v3528_v18 = vld [vmem:[%s4080_s19 + $0x30] sm:$0xff]  }
 0xb46   : > { %2125 = vmatpush1.bf16.msra.mxu0 %v3469_v20  ;;  %v3530_v20 = vld [vmem:[%s4080_s19 + $0x78] sm:$0xff]  }
 0xb47   : > { %2126 = vmatprep.subr.bf16.mxu0 %v3477_v26 }
 0xb4a   : > { %2127 = vmatpush1.bf16.msra.mxu0 %v3475_v28 }
 0xb4b   : > { %2128 = vmatprep.subr.bf16.mxu0 %v3483_v31 }
 0xb4e   : > { %2129 = vmatpush1.bf16.msra.mxu0 %v3481_v33 }
 0xb4f   : > { %2130 = vmatprep.subr.bf16.mxu0 %v3489_v35 }
 0xb52   : > { %2131 = vmatpush1.bf16.msra.mxu0 %v3487_v37 }
 0xb53   : > { %2132 = vmatprep.subr.bf16.mxu0 %v3495_v39 }
 0xb56   : > { %2133 = vmatpush1.bf16.msra.mxu0 %v3493_v41 }
 0xb57   : > { %2134 = vmatprep.subr.bf16.mxu0 %v3501_v45 }
 0xb5a   : > { %2135 = vmatpush1.bf16.msra.mxu0 %v3499_v44 }
 0xb5b   : > { %3086 = vmatprep.subr.bf16.mxu0 %v3503_v47 }
 0xc10   : > { %v1856_v63 = vpop.f32.mrb[8].mxu0 }
 0xc11   : > { %v4254_v7 = vadd.f32 %v1856_v63, %v4123_v60  ;;  %v3203_v8 = vpop.f32.mrb[9].mxu0  ;;  %v3460_v60 = vld [vmem:[%s4067_s30 + $0x120] ss:$16 sps:$4 sm:$0xff]   ;;  %v3515_v63 = vld [vmem:[%s4080_s19 + $0xd8] sm:$0xff]  }
 0xc12   : > { %v1859_v9 = vpop.f32.mrb[10].mxu0  ;;  %2082 = vmatpush1.bf16.msra.mxu1 %v3460_v60  ;;  %v3516_v8 = vld [vmem:[%s4080_s19 + $0x18] sm:$0xff]   ;;  %v3525_v60 = vld [vmem:[%s4080_s19 + $0xa8] sm:$0xff]  }
 0xc13   : > { %1865 = vadd.xlane.f32.xlu0 %v4254_v7  ;;  %v3204_v10 = vpop.f32.mrb[11].mxu0  ;;  %2083 = vmatprep.subr.bf16.mxu1 %v3468_v17  ;;  %v3517_v9 = vld [vmem:[%s4080_s19 + $0x98] sm:$0xff]   ;;  %v3527_v17 = vld [vmem:[%s4080_s19 + $0xf0] sm:$0xff]  }
 0xc14   : > { %v3518_v10 = vld [vmem:[%s4080_s19 + $0x60] sm:$0xff]  }
 0xc16   : > { %2084 = vmatpush1.bf16.msra.mxu1 %v3466_v19  ;;  %v3529_v19 = vld [vmem:[%s4080_s19 + $0xb0] sm:$0xff]  }
 0xc17   : > { %2085 = vmatprep.subr.bf16.mxu1 %v3474_v25 }
 0xc1a   : > { %2086 = vmatpush1.bf16.msra.mxu1 %v3472_v27 }
 0xc1b   : > { %2087 = vmatprep.subr.bf16.mxu1 %v3480_v30 }
 0xc1e   : > { %2088 = vmatpush1.bf16.msra.mxu1 %v3478_v32 }
 0xc1f   : > { %2089 = vmatprep.subr.bf16.mxu1 %v3486_v34 }
 0xc22   : > { %2090 = vmatpush1.bf16.msra.mxu1 %v3484_v36 }
 0xc23   : > { %2091 = vmatprep.subr.bf16.mxu1 %v3492_v38 }
 0xc26   : > { %2092 = vmatpush1.bf16.msra.mxu1 %v3490_v40 }
 0xc27   : > { %2093 = vmatprep.subr.bf16.mxu1 %v3498_v42 }
 0xc2a   : > { %2094 = vmatpush1.bf16.msra.mxu1 %v3496_v43 }
 0xc2b   : > { %3064 = vmatprep.subr.bf16.mxu1 %v3502_v46 }
 0xca0   : > { %v1866_v21 = vpop.xlane.xlu0 %1865 }
 0xca1   : > { %v1867_v22 = vmul.f32 0.0078125, %v1866_v21  ;;  %v3531_v21 = vld [vmem:[%s4080_s19 + $0xf8] sm:$0xff]  }
 0xca3   : > { %v1868_v23 = vsub.f32 %v4254_v7, %v1867_v22  ;;  %v3532_v22 = vld [vmem:[%s4080_s19 + $0x38] sm:$0xff]  }
 0xca5   : > { %v1869_v24 = vmul.f32 %v1868_v23, %v1868_v23 }
 0xca7   : > { %1870 = vadd.xlane.f32.xlu1 %v1869_v24 }
 0xd34   : > { %v1871_v48 = vpop.xlane.xlu1 %1870 }
 0xd35   : > { %v1872_v49 = vmul.f32 0.0078125, %v1871_v48 }
 0xd37   : > { %v1873_v50 = vadd.f32 1e-05, %v1872_v49 }
 0xd39   : > { %3548 = vrsqrt.f32 %v1873_v50 }
 0xd43   : > { %v3549_v51 = vpop.eup %3548 }
 0xd44   : > { %v1875_v53 = vmul.f32 %v3549_v51, %v1868_v23  ;;  %v3533_v23 = vld [vmem:[%s4080_s19 + $0xb8] sm:$0xff]  }
 0xd46   : > { %v1880_v55 = vmul.f32 %v2916_v52, %v1875_v53 }
 0xd48   : > { %v1885_v56 = vadd.f32 %v2917_v54, %v1880_v55 }
 0xd4a   : > { %v1886_v59 = vpack.c.bf16 %v1885_v56, %v1885_v56 }
 0xd4c   : > { %2112 = vmatmul.mubr.bf16.vlgmr.msra.gmra.mrb[12].mxu1 %v1886_v59  ;;  %2153 = vmatmul.mubr.bf16.vlgmr.msra.gmra.mrb[12].mxu0 %v1886_v59 }
 0xd4d   : > { %3065 = vmatpush3.bf16.msra.mxu1 %v3504_v57  ;;  %3087 = vmatpush3.bf16.msra.mxu0 %v3505_v58 }
 0xd4e   : > { %3066 = vmatprep.subr.bf16.mxu1 %v3506_v61  ;;  %3088 = vmatprep.subr.bf16.mxu0 %v3507_v62 }
 0xd51   : > { %3067 = vmatpush3.bf16.msra.mxu1 %v3508_v0  ;;  %3089 = vmatpush3.bf16.msra.mxu0 %v3509_v1 }
 0xd52   : > { %3068 = vmatprep.subr.bf16.mxu1 %v3510_v2  ;;  %3090 = vmatprep.subr.bf16.mxu0 %v3511_v3 }
 0xd55   : > { %3069 = vmatpush3.bf16.msra.mxu1 %v3512_v4  ;;  %3091 = vmatpush3.bf16.msra.mxu0 %v3513_v5 }
 0xd56   : > { %3070 = vmatprep.subr.bf16.mxu1 %v3514_v6  ;;  %3092 = vmatprep.subr.bf16.mxu0 %v3515_v63  ;;  %v3558_v63 = vld [vmem:[#allocation4 + $0xa0] sm:$0xff] (!%p2982_p0)  }
 0xd59   : > { %3071 = vmatpush3.bf16.msra.mxu1 %v3516_v8  ;;  %3093 = vmatpush3.bf16.msra.mxu0 %v3517_v9  ;;  %v3804_v8 = vmov (!%p2982_p0), 0.0   ;;  %v3559_v9 = vld [vmem:[#allocation4 + $0xa8] sm:$0xff] (!%p2982_p0)  }
 0xd5a   : > { %3072 = vmatprep.subr.bf16.mxu1 %v3518_v10  ;;  %3094 = vmatprep.subr.bf16.mxu0 %v3519_v11  ;;  %v3560_v10 = vld [vmem:[#allocation4 + $0xb0] sm:$0xff] (!%p2982_p0)   ;;  %v3561_v11 = vld [vmem:[#allocation4 + $0xb8] sm:$0xff] (!%p2982_p0)  }
 0xd5d   : > { %3073 = vmatpush3.bf16.msra.mxu1 %v3520_v12  ;;  %3095 = vmatpush3.bf16.msra.mxu0 %v3521_v13  ;;  %v3563_v12 = vld [vmem:[#allocation4 + $0xc8] sm:$0xff] (!%p2982_p0)   ;;  %v3564_v13 = vld [vmem:[#allocation4 + $0xd0] sm:$0xff] (!%p2982_p0)  }
 0xd5e   : > { %3074 = vmatprep.subr.bf16.mxu1 %v3522_v14  ;;  %3096 = vmatprep.subr.bf16.mxu0 %v3523_v15  ;;  %v3565_v14 = vld [vmem:[#allocation4 + $0xd8] sm:$0xff] (!%p2982_p0)  }
 0xd61   : > { %3075 = vmatpush3.bf16.msra.mxu1 %v3524_v29  ;;  %3097 = vmatpush3.bf16.msra.mxu0 %v3525_v60  ;;  %v2983_v29 = vld [vmem:[%s4398_s5 + $0x8] ss:$0 sm:$0xff] (!%p2982_p0) }
 0xd62   : > { %3076 = vmatprep.subr.bf16.mxu1 %v3526_v16  ;;  %3098 = vmatprep.subr.bf16.mxu0 %v3527_v17 }
 0xd65   : > { %3077 = vmatpush3.bf16.msra.mxu1 %v3528_v18  ;;  %3099 = vmatpush3.bf16.msra.mxu0 %v3529_v19 }
 0xd66   : > { %3078 = vmatprep.subr.bf16.mxu1 %v3530_v20  ;;  %3100 = vmatprep.subr.bf16.mxu0 %v3531_v21 }
 0xd69   : > { %3079 = vmatpush3.bf16.msra.mxu1 %v3532_v22  ;;  %3101 = vmatpush3.bf16.msra.mxu0 %v3533_v23 }
 0xd6a   : > { %3205 = vmatprep.subr.bf16.mxu0 (!%p2982_p0), %v3804_v8 }
 0xe1f   : > { %v2113_v24 = vpop.f32.mrb[12].mxu1  ;;  %v2154_v25 = vpop.f32.mrb[12].mxu0 }
 0xe20   : > { %v2165_v26 = vmul.f32 0.70710677, %v2113_v24  ;;  %v2167_v27 = vmul.f32 0.70710677, %v2154_v25  ;;  %v2115_v28 = vpop.f32.mrb[13].mxu1  ;;  %v2156_v30 = vpop.f32.mrb[13].mxu0 }
 0xe21   : > { %v2166_v31 = vmul.f32 0.70710677, %v2115_v28  ;;  %v2117_v32 = vpop.f32.mrb[14].mxu1  ;;  %v2158_v33 = vpop.f32.mrb[14].mxu0  ;;  %v2168_v34 = vmul.f32 0.70710677, %v2156_v30 }
 0xe22   : > { %3550 = verf.f32 %v2165_v26  ;;  %v2118_v35 = vpop.f32.mrb[15].mxu1  ;;  %v2159_v36 = vpop.f32.mrb[15].mxu0  ;;  %v2161_v41 = vmul.f32 0.5, %v2113_v24  ;;  %v2163_v44 = vmul.f32 0.5, %v2154_v25  ;;  %v2162_v45 = vmul.f32 0.5, %v2115_v28 }
 0xe23   : > { %3552 = verf.f32 %v2167_v27  ;;  %v2164_v48 = vmul.f32 0.5, %v2156_v30  ;;  %v2992_v28 = vld [vmem:[%s4398_s5 + $0x9] ss:$0 sm:$0xff] (!%p2982_p0) }
 0xe24   : > { %3554 = verf.f32 %v2166_v31  ;;  %v2993_v31 = vld [vmem:[%s4398_s5 + $0xa] ss:$0 sm:$0xff] (!%p2982_p0) }
 0xe25   : > { %3556 = verf.f32 %v2168_v34 }
 0xe2c   : > { %v3551_v37 = vpop.eup %3550 }
 0xe2d   : > { %v3553_v38 = vpop.eup %3552  ;;  %v2173_v39 = vadd.f32 1.0, %v3551_v37 }
 0xe2e   : > { %v3555_v40 = vpop.eup %3554  ;;  %v2175_v42 = vadd.f32 1.0, %v3553_v38 }
 0xe2f   : > { %v3557_v43 = vpop.eup %3556  ;;  %v2174_v46 = vadd.f32 1.0, %v3555_v40  ;;  %v2177_v47 = vmul.f32 %v2173_v39, %v2161_v41 }
 0xe30   : > { %v2176_v49 = vadd.f32 1.0, %v3557_v43  ;;  %v2179_v50 = vmul.f32 %v2175_v42, %v2163_v44 }
 0xe31   : > { %v2178_v51 = vmul.f32 %v2174_v46, %v2162_v45  ;;  %v2181_v54 = vpack.c.bf16 %v2177_v47, %v2177_v47 }
 0xe32   : > { %v2180_v52 = vmul.f32 %v2176_v49, %v2164_v48  ;;  %v2183_v56 = vpack.c.bf16 %v2179_v50, %v2179_v50 }
 0xe33   : > { %v2182_v53 = vpack.c.bf16 %v2178_v51, %v2178_v51 }
 0xe34   : > { %v2184_v55 = vpack.c.bf16 %v2180_v52, %v2180_v52 }
 0xe35   : > { %2473 = vmatprep.mubr.bf16.mxu1 %v2182_v53 }
 0xe36   : > { %2513 = vmatprep.mubr.bf16.mxu0 %v2184_v55  ;;  %2474 = vmatmul.mubr.bf16.vlgmr.msra.gmra.mrb[16].mxu1 %v2181_v54 }
 0xe37   : > { %2514 = vmatmul.mubr.bf16.vlgmr.msra.gmra.mrb[16].mxu0 %v2183_v56 }
 0xe38   : > { %3206 = vmatpush3.bf16.msra.mxu0 (!%p2982_p0), %v3558_v63  ;;  %3221 = vmatprep.mubr.msk.bf16.mxu0 (!%p2982_p0), %vm3805_vm10, %v3804_v8 }
 0xe39   : > { %3207 = vmatprep.subr.bf16.mxu0 (!%p2982_p0), %v3804_v8 }
 0xe3c   : > { %3208 = vmatpush3.bf16.msra.mxu0 (!%p2982_p0), %v3559_v9 }
 0xe3d   : > { %3209 = vmatprep.subr.bf16.mxu0 (!%p2982_p0), %v3804_v8 }
 0xe40   : > { %3210 = vmatpush3.bf16.msra.mxu0 (!%p2982_p0), %v3560_v10 }
 0xe41   : > { %3211 = vmatprep.subr.bf16.mxu0 (!%p2982_p0), %v3804_v8 }
 0xe44   : > { %3212 = vmatpush3.bf16.msra.mxu0 (!%p2982_p0), %v3561_v11 }
 0xe45   : > { %3213 = vmatprep.subr.bf16.mxu0 (!%p2982_p0), %v3804_v8 }
 0xf09   : > { %v3080_v57 = vpop.f32.mrb[16].mxu1 }
 0xf0a   : > { %v3102_v58 = vpop.f32.mrb[16].mxu0  ;;  %v3081_v59 = vpop.f32.mrb[17].mxu1 }
 0xf0b   : > { %v3082_v61 = vadd.f32 %v3081_v59, %v3080_v57  ;;  %v3103_v62 = vpop.f32.mrb[17].mxu0  ;;  %v3083_v0 = vpop.f32.mrb[18].mxu1 }
 0xf0c   : > { %v3104_v1 = vadd.f32 %v3103_v62, %v3102_v58  ;;  %v3105_v2 = vpop.f32.mrb[18].mxu0  ;;  %v3084_v3 = vpop.f32.mrb[19].mxu1  ;;  %2526 = sbr.rel (%p2982_p0) target bundleno = 4398 (0x112e), region = 80 }
 0xf0d   : > { %v3106_v4 = vpop.f32.mrb[19].mxu0 }
 0xf0e   : > { %v2516_v5 = vadd.f32 %v3104_v1, %v3082_v61 }
 0xf10   : > { %v2521_v6 = vadd.f32 %v2516_v5, %v4254_v7  ;;  %v3562_v7 = vld [vmem:[#allocation4 + $0xc0] sm:$0xff] (!%p2982_p0)  }
 0xf11   : > { %3214 = vmatpush3.bf16.msra.mxu0 (!%p2982_p0), %v3562_v7 }
 0xf12   : > { %2522 = vst [vmem:[#allocation2] sm:$0xff] %v2521_v6  ;;  %3215 = vmatprep.subr.bf16.mxu0 (!%p2982_p0), %v3804_v8  ;;  %v2527_v15 = vpack.c.bf16 (!%p2982_p0), %v2521_v6, %v2521_v6 }
 0xf15   : > { %3216 = vmatpush3.bf16.msra.mxu0 %v3563_v12 }
 0xf16   : > { %3217 = vmatprep.subr.bf16.mxu0 %v3804_v8 }
 0xf19   : > { %3218 = vmatpush3.bf16.msra.mxu0 %v3564_v13 }
 0xf1a   : > { %3219 = vmatprep.subr.bf16.mxu0 %v3804_v8 }
 0xf1d   : > { %3220 = vmatpush3.bf16.msra.mxu0 %v3565_v14 }
 0xf20   : > { %3222 = vmatmul.mubr.bf16.vlgmr.msra.gmra.mrb[0].mxu0 %v2527_v15 }
 0xff3   : > { %v2631_v60 = vpop.f32.mrb[0].mxu0 }
 0xff4   : > { %v2632_v16 = vadd.f32 %v2983_v29, %v2631_v60  ;;  %v3223_v17 = vpop.f32.mrb[1].mxu0 }
 0xff5   : > { %v2634_v18 = vpop.f32.mrb[2].mxu0 }
 0xff6   : > { %2639 = vadd.xlane.f32.xlu0 %v2632_v16  ;;  %v3224_v19 = vpop.f32.mrb[3].mxu0 }
0x1083   : > { %v2640_v20 = vpop.xlane.xlu0 %2639 }
0x1084   : > { %v2641_v21 = vmul.f32 0.0078125, %v2640_v20 }
0x1086   : > { %v2642_v22 = vsub.f32 %v2632_v16, %v2641_v21 }
0x1088   : > { %v2643_v23 = vmul.f32 %v2642_v22, %v2642_v22 }
0x108a   : > { %2644 = vadd.xlane.f32.xlu0 %v2643_v23 }
0x1117   : > { %v2645_v24 = vpop.xlane.xlu0 %2644 }
0x1118   : > { %v2646_v25 = vmul.f32 0.0078125, %v2645_v24 }
0x111a   : > { %v2647_v26 = vadd.f32 1e-05, %v2646_v25 }
0x111c   : > { %3566 = vrsqrt.f32 %v2647_v26 }
0x1126   : > { %v3567_v27 = vpop.eup %3566 }
0x1127   : > { %v2649_v30 = vmul.f32 %v3567_v27, %v2642_v22 }
0x1129   : > { %v2654_v32 = vmul.f32 %v2992_v28, %v2649_v30 }
0x112b   : > { %v2659_v33 = vadd.f32 %v2993_v31, %v2654_v32 }
0x112d   : > { %2660 = vst [vmem:[#allocation11] sm:$0xff] %v2659_v33 }
0x112e PF: > { %p3278_p8 = scmp.eq.s32.totalorder %s3882_s17, 3  ;;  %s3806_s16 = smov [#allocation11]  }
0x112f   : > { %s2668_s26 = sshll.u32 %s3806_s16, 4  ;;  %s3807_s23 = smov [#allocation12]   ;;  %s2669_s26 = int_to_ptr.vmem [resolvable:$true] %s2668_s26 }
0x1130   : > { %s2679_s20 = sshll.u32 %s3807_s23, 4  ;;  %s3684_s10 = scalar_lea.vmem %s2669_s26, 128  ;;  %s2680_s20 = int_to_ptr.vmem [resolvable:$true] %s2679_s20 }
0x1131   : > { %p3685_p2 = scmp.ne.s32.totalorder %s2669_s26, %s3684_s10  ;;  %p3691_p11 = scmp.lt.s32.totalorder %s2669_s26, %s2669_s26 }
0x1132   : > { %p3692_p12 = scmp.lt.s32.totalorder %s3684_s10, %s3684_s10 }
0x1133   : > { %p3686_p4 = pnand %p3685_p2, %p3278_p8 }
0x1134   : > { %p3693_p13 = por %p3692_p12, %p3691_p11 }
0x1135   : > { %p3687_p7 = pneg %p3686_p4 }
0x1137   : > { %p3694_p5 = pnand %p3693_p13, %p3687_p7 }
0x1139   : > { %3697 = shalt.err (!%p3694_p5)
}
0x113a   : > { %s4445_s13 = sld [smem:[#allocation22_spill]] }
0x1140   : > { %s4446_s3 = smov %s4445_s13  ;;  %s3698_s29 = scalar_lea.hbm %s4445_s13, 128 }
0x1141   : > { %p3699_p10 = scmp.ne.s32.totalorder %s4446_s3, %s3698_s29  ;;  %p3704_p3 = scmp.lt.u32.totalorder %s3698_s29, %s4446_s3 }
0x1143   : > { %p3700_p1 = pnand %p3699_p10, %p3278_p8 }
0x1145   : > { %p3701_p9 = pneg %p3700_p1 }
0x1147   : > { %p3706_p6 = pnand %p3704_p3, %p3701_p9 }
0x1149   : > { %3709 = shalt.err (!%p3706_p6)
}
0x114a   : > { %3252 = dma.vmem_to_hbm [thread:$0]  (%p3278_p8), %s2669_s26, 128, %s4446_s3, [#allocation6]  }
0x114b   : > { %s3710_s19 = scalar_lea.vmem %s2680_s20, 128  ;;  %p3717_p7 = scmp.lt.s32.totalorder %s2680_s20, %s2680_s20 }
0x114c   : > { %p3711_p0 = scmp.ne.s32.totalorder %s2680_s20, %s3710_s19  ;;  %p3718_p11 = scmp.lt.s32.totalorder %s3710_s19, %s3710_s19 }
0x114e   : > { %p3712_p2 = pnand %p3711_p0, %p3278_p8  ;;  %p3719_p12 = por %p3718_p11, %p3717_p7 }
0x1150   : > { %p3713_p4 = pneg %p3712_p2 }
0x1152   : > { %p3720_p13 = pnand %p3719_p12, %p3713_p4 }
0x1154   : > { %3723 = shalt.err (!%p3720_p13)
}
0x1155   : > { %s4447_s27 = sld [smem:[#allocation23_spill]] }
0x115b   : > { %s3724_s16 = scalar_lea.hbm %s4447_s27, 128 }
0x115c   : > { %p3725_p5 = scmp.ne.s32.totalorder %s4447_s27, %s3724_s16  ;;  %p3730_p9 = scmp.lt.u32.totalorder %s3724_s16, %s4447_s27 }
0x115e   : > { %p3726_p10 = pnand %p3725_p5, %p3278_p8 }
0x1160   : > { %p3727_p1 = pneg %p3726_p10 }
0x1162   : > { %p3732_p3 = pnand %p3730_p9, %p3727_p1 }
0x1164   : > { %3735 = shalt.err (!%p3732_p3)
}
0x1165   : > { %3254 = dma.vmem_to_hbm [thread:$0]  (%p3278_p8), %s2680_s20, 128, %s4447_s27, [#allocation13]  }
0x1166   : > { %3765 = dma.done.wait (%p3278_p8), [#allocation6], 128  }
0x1167   : > { %3767 = vsyncadd (%p3278_p8), [#allocation6], 4294967168 }
0x1168   : > { %3769 = dma.done.wait (%p3278_p8), [#allocation13], 128  }
0x1169   : > { %3771 = vsyncadd (%p3278_p8), [#allocation13], 4294967168 }
0x116a PF: > { %s4448_s16 = sld [smem:[#allocation19_spill]]  ;;  %s4449_s29 = sld [smem:[#allocation20_spill]] }
0x116b   : > { %s4450_s13 = smov %s3778_s14  ;;  %s4451_s14 = smov %s3782_s15 }
0x1170   : > { %p22_p6 = scmp.ge.s32.totalorder %s4448_s16, 6   ;;  %s4452_s15 = smov %s4449_s29 }
0x1172   :  { %24 = sbr.rel (!%p22_p6) target bundleno = 9 (0x9), region = 130 }
0x1179   :  { %2696 = vsyncpa [#allocation5], 1 }
0x117a   :  { %2698 = vsyncpa [#allocation5 + $0x1], 1 }
0x117b   :  { %2699 = vsyncpa [#allocation8], 1 }
0x117c   :  { %2700 = vsyncpa [#allocation6], 1 }
0x117d   :  { %2702 = vsyncpa [#allocation6 + $0x1], 1 }
0x117e   :  { %2703 = vsyncpa [#allocation13], 1 }

</bundles_post_ra>
